<compile_context>
chip_gen: v7x
topology: tpu7x:2x2x1
jax: 0.10.0
libtpu: 0.0.40
codegen_flags: <defaults>
</compile_context>

<pallas_src>
import math

import jax
import jax.numpy as jnp
from jax.experimental import pallas as pl
from jax.experimental.pallas import tpu as pltpu

LN_EPS = 1e-12  # LayoutLM / BERT layer_norm_eps
# Safe on v5e/v6e (128 MiB physical) and v7x (64 MiB physical).
# TODO(synk): raise towards ~96 MiB on v5e/v6e for deeper buffering at large S.
VMEM_LIMIT_BYTES = 48 * 1024 * 1024


# ---------------------------------------------------------------------------
# In-kernel helpers (f32 element-wise math)
# ---------------------------------------------------------------------------
def _layer_norm(x, g, b):
    mu = jnp.mean(x, axis=-1, keepdims=True)
    var = jnp.mean(jnp.square(x - mu), axis=-1, keepdims=True)
    return (x - mu) * jax.lax.rsqrt(var + LN_EPS) * g + b


def _gelu(x):
    c = 0.7978845608028654  # sqrt(2/pi)
    return 0.5 * x * (1.0 + jnp.tanh(c * (x + 0.044715 * x * x * x)))


# ---------------------------------------------------------------------------
# Fused encoder-stack + classifier kernel.
# One grid step = (batch element b, layer l); layer axis innermost.
# The running (S, H) activation lives in a VMEM scratch across the layer axis.
# ---------------------------------------------------------------------------
def make_stack_kernel(hidden, num_heads, head_dim):
    f32 = jnp.float32
    bf16 = jnp.bfloat16
    H, nh, hd = hidden, num_heads, head_dim

    def kernel(x_ref, maskb_ref, lnin_g_ref, lnin_b_ref,
               wqkv_ref, bqkv_ref, wo_ref, bo_ref,
               ln1g_ref, ln1b_ref, w1_ref, b1_ref, w2_ref, b2_ref,
               ln2g_ref, ln2b_ref, wc_ref, bc_ref,
               logits_ref, x_sc):
        l = pl.program_id(1)

        # Layer 0: load the (bf16) embedding block and apply the embeddings
        # LayerNorm once; result becomes the resident activation.
        @pl.when(l == 0)
        def _():
            x0 = x_ref[0].astype(f32)
            x_sc[...] = _layer_norm(x0, lnin_g_ref[...], lnin_b_ref[...])

        x = x_sc[...]                    # (S, H) f32, resident across layers
        mask_bias = maskb_ref[0]         # (1, S) additive mask bias
        x_bf = x.astype(bf16)

        # ---- Self-attention -------------------------------------------------
        # Fused QKV projection: one MXU launch with N = 3H.  The attention
        # scale 1/sqrt(head_dim) is pre-folded into the Q weight/bias.
        qkv = jnp.dot(x_bf, wqkv_ref[0], preferred_element_type=f32) + bqkv_ref[0]

        def head_stack(base):
            # (nh, S, hd) head-major stack, cast to bf16 once.
            return jnp.stack(
                [qkv[:, base + h * hd: base + (h + 1) * hd] for h in range(nh)],
                axis=0).astype(bf16)

        q3 = head_stack(0)
        k3 = head_stack(H)
        v3 = head_stack(2 * H)

        # Head-batched score matmul + softmax + PV matmul.
        s = jnp.einsum("hqd,hkd->hqk", q3, k3, preferred_element_type=f32)
        s = s + mask_bias                              # (1,S) -> (nh,S,S)
        s = s - jnp.max(s, axis=-1, keepdims=True)
        p = jnp.exp(s)
        p = p * pl.reciprocal(jnp.sum(p, axis=-1, keepdims=True), approx=True)
        ctx3 = jnp.einsum("hqk,hkd->hqd", p.astype(bf16), v3,
                          preferred_element_type=f32)  # (nh, S, hd)
        # Concatenate heads back along lanes -> (S, H) for a single K=H
        # output-projection matmul.
        ctx = jnp.concatenate([ctx3[h] for h in range(nh)], axis=-1).astype(bf16)

        attn = jnp.dot(ctx, wo_ref[0], preferred_element_type=f32) + bo_ref[0]
        h1 = _layer_norm(attn + x, ln1g_ref[0], ln1b_ref[0])

        # ---- FFN ------------------------------------------------------------
        # TODO(synk): compute the GELU polynomial in bf16 on v6e/v7x (packed
        # bf16 VALU); kept in f32 so the same kernel is optimal on v5e.
        inter = _gelu(jnp.dot(h1.astype(bf16), w1_ref[0],
                              preferred_element_type=f32) + b1_ref[0])
        ffn = jnp.dot(inter.astype(bf16), w2_ref[0],
                      preferred_element_type=f32) + b2_ref[0]
        h2 = _layer_norm(ffn + h1, ln2g_ref[0], ln2b_ref[0])
        x_sc[...] = h2

        # Last layer: fused classifier head, lane-dense 128-padded logits.
        @pl.when(l == pl.num_programs(1) - 1)
        def _():
            logits_ref[0] = jnp.dot(h2.astype(bf16), wc_ref[...],
                                    preferred_element_type=f32) + bc_ref[...]

    return kernel


def layoutlm_encoder_classifier(x_emb, mask_bias, params, *, num_heads):
    """x_emb: (B, S, H) bf16 summed embeddings (pre-LN). Returns (B, S, NLp) f32."""
    B, S, H = x_emb.shape
    stk = params["stacked"]
    L = stk["wqkv"].shape[0]
    I = stk["w1"].shape[-1]
    NLp = params["classifier"]["w_pad"].shape[-1]
    head_dim = H // num_heads

    def batch_spec(shape):   # varies with b only (not refetched across l)
        return pl.BlockSpec(shape, lambda b, l: (b, 0, 0))

    def layer_spec(shape):   # varies with l only (streamed, double-buffered)
        return pl.BlockSpec(shape, lambda b, l: (l, 0, 0))

    def const_spec(shape):   # grid-invariant (tiny)
        return pl.BlockSpec(shape, lambda b, l: (0, 0))

    in_specs = [
        batch_spec((1, S, H)),          # x_emb (bf16)
        batch_spec((1, 1, S)),          # mask bias
        const_spec((1, H)), const_spec((1, H)),          # embeddings LN
        layer_spec((1, H, 3 * H)), layer_spec((1, 1, 3 * H)),   # fused QKV
        layer_spec((1, H, H)), layer_spec((1, 1, H)),           # attn out proj
        layer_spec((1, 1, H)), layer_spec((1, 1, H)),           # LN1
        layer_spec((1, H, I)), layer_spec((1, 1, I)),           # FFN in
        layer_spec((1, I, H)), layer_spec((1, 1, H)),           # FFN out
        layer_spec((1, 1, H)), layer_spec((1, 1, H)),           # LN2
        const_spec((H, NLp)), const_spec((1, NLp)),             # classifier
    ]
    operands = [
        x_emb, mask_bias,
        params["emb"]["ln_g"], params["emb"]["ln_b"],
        stk["wqkv"], stk["bqkv"], stk["wo"], stk["bo"],
        stk["ln1_g"], stk["ln1_b"], stk["w1"], stk["b1"],
        stk["w2"], stk["b2"], stk["ln2_g"], stk["ln2_b"],
        params["classifier"]["w_pad"], params["classifier"]["b_pad"],
    ]

    kernel = make_stack_kernel(H, num_heads, head_dim)
    logits_pad = pl.pallas_call(
        kernel,
        out_shape=jax.ShapeDtypeStruct((B, S, NLp), jnp.float32),
        grid=(B, L),
        in_specs=in_specs,
        out_specs=pl.BlockSpec((1, S, NLp), lambda b, l: (b, 0, 0)),
        scratch_shapes=[pltpu.VMEM((S, H), jnp.float32)],
        compiler_params=pltpu.CompilerParams(
            dimension_semantics=("parallel", "arbitrary"),
            vmem_limit_bytes=VMEM_LIMIT_BYTES),
    )(*operands)
    return logits_pad


# ---------------------------------------------------------------------------
# Masked token-classification cross-entropy (ignore_index = -100, mean).
# Consumes the lane-dense 128-padded logits slab directly; pad classes are
# masked with -inf-like values inside the kernel.
# ---------------------------------------------------------------------------
def make_loss_kernel(num_labels):
    def kernel(logits_ref, labels_ref, mask_ref, out_ref):
        logits = logits_ref[...]                       # (B, S, Cpad) f32
        labels = labels_ref[...]                       # (B, S) i32
        mask = mask_ref[...]                           # (B, S) i32

        class_ids = jax.lax.broadcasted_iota(jnp.int32, logits.shape, 2)
        valid_class = class_ids < num_labels
        logits = jnp.where(valid_class, logits, -1e30)

        active_labels = jnp.where(mask == 1, labels, -100)
        active_labels = jnp.clip(active_labels, -100, num_labels - 1)
        valid = active_labels != -100

        m = jnp.max(logits, axis=-1, keepdims=True)
        lse = m + jnp.log(jnp.sum(jnp.exp(logits - m), axis=-1, keepdims=True))
        logp = logits - lse

        onehot = (class_ids == active_labels[..., None]).astype(jnp.float32)
        picked = jnp.sum(jnp.where(valid_class, logp * onehot, 0.0), axis=-1)

        nll = jnp.where(valid, -picked, 0.0)
        total = jnp.sum(nll)
        count = jnp.maximum(jnp.sum(valid.astype(jnp.float32)), 1.0)
        out_ref[0, 0] = total / count
    return kernel


def token_cls_loss(logits_pad, labels, attention_mask, num_labels):
    # TODO(synk): tile over a (B,) grid with an SMEM running total if B*S*Cpad
    # grows beyond VMEM at production sizes.
    loss = pl.pallas_call(
        make_loss_kernel(num_labels),
        out_shape=jax.ShapeDtypeStruct((1, 1), jnp.float32),
        in_specs=[pl.BlockSpec(memory_space=pltpu.MemorySpace.VMEM)] * 3,
        out_specs=pl.BlockSpec(memory_space=pltpu.MemorySpace.SMEM),
    )(logits_pad, labels.astype(jnp.int32), attention_mask.astype(jnp.int32))
    return loss[0, 0]


# ---------------------------------------------------------------------------
# LayoutLM embeddings (gathers are glue in plain JAX; the embeddings LayerNorm
# is fused into the encoder kernel at l == 0).
# ---------------------------------------------------------------------------
def layoutlm_embeddings_sum(params, input_ids, token_type_ids, bbox):
    p = params["emb"]
    B, S = input_ids.shape
    pos = jnp.arange(S, dtype=jnp.int32)[None, :]
    x = (p["word"][input_ids]
         + p["pos"][pos]
         + p["x"][bbox[..., 0]]           # left
         + p["y"][bbox[..., 1]]           # upper
         + p["x"][bbox[..., 2]]           # right
         + p["y"][bbox[..., 3]]           # lower
         + p["h"][bbox[..., 3] - bbox[..., 1]]
         + p["w"][bbox[..., 2] - bbox[..., 0]]
         + p["type"][token_type_ids])
    return x.astype(jnp.float32)


# ---------------------------------------------------------------------------
# Parameter init (deterministic, synthetic).  Per-layer weights are stacked
# with a leading layer axis; matmul weights in bf16, biases / LN / embeddings
# in f32.  Attention scale folded into Q weight/bias.
# ---------------------------------------------------------------------------
def init_params(key, cfg):
    H, I, NL, L = cfg["hidden"], cfg["intermediate"], cfg["num_labels"], cfg["num_layers"]
    nh = cfg["num_heads"]
    hd = H // nh
    NLp = ((NL + 127) // 128) * 128  # lane-dense padded classifier width

    def normal(k, shape):
        return 0.02 * jax.random.normal(k, shape, dtype=jnp.float32)

    keys = iter(jax.random.split(key, 16))
    emb = {
        "word": normal(next(keys), (cfg["vocab_size"], H)),
        "pos": normal(next(keys), (cfg["max_pos"], H)),
        "x": normal(next(keys), (cfg["max_2d_pos"], H)),
        "y": normal(next(keys), (cfg["max_2d_pos"], H)),
        "h": normal(next(keys), (cfg["max_2d_pos"], H)),
        "w": normal(next(keys), (cfg["max_2d_pos"], H)),
        "type": normal(next(keys), (cfg["type_vocab"], H)),
        "ln_g": jnp.ones((1, H), jnp.float32),
        "ln_b": jnp.zeros((1, H), jnp.float32),
    }

    k_wq, k_wk, k_wv, k_wo, k_w1, k_w2 = jax.random.split(next(keys), 6)
    scale = 1.0 / math.sqrt(hd)
    wq = normal(k_wq, (L, H, H)) * scale            # fold attention scale into Q
    wk = normal(k_wk, (L, H, H))
    wv = normal(k_wv, (L, H, H))
    wqkv = jnp.concatenate([wq, wk, wv], axis=-1).astype(jnp.bfloat16)   # (L, H, 3H)
    bqkv = jnp.zeros((L, 1, 3 * H), jnp.float32)    # q bias (zero) already "scaled"

    stacked = {
        "wqkv": wqkv, "bqkv": bqkv,
        "wo": normal(k_wo, (L, H, H)).astype(jnp.bfloat16),
        "bo": jnp.zeros((L, 1, H), jnp.float32),
        "ln1_g": jnp.ones((L, 1, H), jnp.float32),
        "ln1_b": jnp.zeros((L, 1, H), jnp.float32),
        "w1": normal(k_w1, (L, H, I)).astype(jnp.bfloat16),
        "b1": jnp.zeros((L, 1, I), jnp.float32),
        "w2": normal(k_w2, (L, I, H)).astype(jnp.bfloat16),
        "b2": jnp.zeros((L, 1, H), jnp.float32),
        "ln2_g": jnp.ones((L, 1, H), jnp.float32),
        "ln2_b": jnp.zeros((L, 1, H), jnp.float32),
    }

    wc = normal(next(keys), (H, NL))
    w_pad = jnp.zeros((H, NLp), jnp.float32).at[:, :NL].set(wc).astype(jnp.bfloat16)
    b_pad = jnp.zeros((1, NLp), jnp.float32)
    classifier = {"w_pad": w_pad, "b_pad": b_pad}

    return {"emb": emb, "stacked": stacked, "classifier": classifier}


# ---------------------------------------------------------------------------
# Full forward (mirrors NdFFNLayoutLMForTokenClassification.forward)
# ---------------------------------------------------------------------------
def forward(params, input_ids, attention_mask, token_type_ids, bbox,
            labels=None, *, num_heads, num_labels):
    B, S = input_ids.shape
    # Summed embeddings carried to the kernel in bf16 (LN happens in-kernel, f32).
    x = layoutlm_embeddings_sum(params, input_ids, token_type_ids, bbox).astype(jnp.bfloat16)
    # Additive attention-mask bias (classic BERT -10000.0 for masked positions).
    mask_bias = ((1.0 - attention_mask.astype(jnp.float32)) * -10000.0).reshape(B, 1, S)

    logits_pad = layoutlm_encoder_classifier(x, mask_bias, params, num_heads=num_heads)

    logits = logits_pad[..., :num_labels]          # user-facing logits
    result = {"logits": logits}
    if labels is not None:
        # Loss kernel consumes the lane-dense padded slab directly.
        result["loss"] = token_cls_loss(logits_pad, labels, attention_mask, num_labels)
    return result


if __name__ == "__main__":
    cfg = dict(vocab_size=100, max_pos=64, max_2d_pos=128, type_vocab=2,
               hidden=32, intermediate=64, num_layers=2, num_heads=2,
               num_labels=5)
    B, S = 2, 8

    key = jax.random.PRNGKey(0)
    k_param, k_ids, k_bbox0, k_bbox1, k_labels = jax.random.split(key, 5)

    params = init_params(k_param, cfg)

    input_ids = jax.random.randint(k_ids, (B, S), 0, cfg["vocab_size"], dtype=jnp.int32)
    token_type_ids = jnp.zeros((B, S), dtype=jnp.int32)
    attention_mask = (jnp.arange(S)[None, :] < jnp.array([[S], [S - 2]])).astype(jnp.int32)

    xy0 = jax.random.randint(k_bbox0, (B, S, 2), 0, 60, dtype=jnp.int32)
    wh = jax.random.randint(k_bbox1, (B, S, 2), 0, 60, dtype=jnp.int32)
    bbox = jnp.concatenate([xy0, xy0 + wh], axis=-1)   # [x0, y0, x1, y1]

    labels = jax.random.randint(k_labels, (B, S), 0, cfg["num_labels"], dtype=jnp.int32)

    out = forward(params, input_ids, attention_mask, token_type_ids, bbox,
                  labels=labels, num_heads=cfg["num_heads"],
                  num_labels=cfg["num_labels"])

    jax.block_until_ready(out["logits"])
    jax.block_until_ready(out["loss"])
    print("KERNEL_OK")
</pallas_src>

<mosaic_0001>
module attributes {stable_mosaic.version = 11 : i64} {
  func.func @kernel(%arg0: i32, %arg1: i32, %arg2: memref<1x8x32xbf16, #tpu.memory_space<vmem>>, %arg3: memref<1x1x8xf32, #tpu.memory_space<vmem>>, %arg4: memref<1x32xf32, #tpu.memory_space<vmem>>, %arg5: memref<1x32xf32, #tpu.memory_space<vmem>>, %arg6: memref<1x32x96xbf16, #tpu.memory_space<vmem>>, %arg7: memref<1x1x96xf32, #tpu.memory_space<vmem>>, %arg8: memref<1x32x32xbf16, #tpu.memory_space<vmem>>, %arg9: memref<1x1x32xf32, #tpu.memory_space<vmem>>, %arg10: memref<1x1x32xf32, #tpu.memory_space<vmem>>, %arg11: memref<1x1x32xf32, #tpu.memory_space<vmem>>, %arg12: memref<1x32x64xbf16, #tpu.memory_space<vmem>>, %arg13: memref<1x1x64xf32, #tpu.memory_space<vmem>>, %arg14: memref<1x64x32xbf16, #tpu.memory_space<vmem>>, %arg15: memref<1x1x32xf32, #tpu.memory_space<vmem>>, %arg16: memref<1x1x32xf32, #tpu.memory_space<vmem>>, %arg17: memref<1x1x32xf32, #tpu.memory_space<vmem>>, %arg18: memref<32x128xbf16, #tpu.memory_space<vmem>>, %arg19: memref<1x128xf32, #tpu.memory_space<vmem>>, %arg20: memref<1x8x128xf32, #tpu.memory_space<vmem>>, %arg21: memref<8x32xf32, #tpu.memory_space<vmem>>) attributes {dimension_semantics = [#tpu.dimension_semantics<parallel>, #tpu.dimension_semantics<arbitrary>], iteration_bounds = array<i64: 2, 2>, scalar_prefetch = 0 : i64, scratch_operands = 1 : i64, tpu.core_type = #tpu.core_type<tc>, window_params = [{transform_indices = @transform_0, window_bounds = array<i64: 1, 8, 32>}, {transform_indices = @transform_1, window_bounds = array<i64: 1, 1, 8>}, {pipeline_mode = #tpu.pipeline_mode<synchronous>, transform_indices = @transform_2, window_bounds = array<i64: 1, 32>}, {pipeline_mode = #tpu.pipeline_mode<synchronous>, transform_indices = @transform_3, window_bounds = array<i64: 1, 32>}, {transform_indices = @transform_4, window_bounds = array<i64: 1, 32, 96>}, {transform_indices = @transform_5, window_bounds = array<i64: 1, 1, 96>}, {transform_indices = @transform_6, window_bounds = array<i64: 1, 32, 32>}, {transform_indices = @transform_7, window_bounds = array<i64: 1, 1, 32>}, {transform_indices = @transform_8, window_bounds = array<i64: 1, 1, 32>}, {transform_indices = @transform_9, window_bounds = array<i64: 1, 1, 32>}, {transform_indices = @transform_10, window_bounds = array<i64: 1, 32, 64>}, {transform_indices = @transform_11, window_bounds = array<i64: 1, 1, 64>}, {transform_indices = @transform_12, window_bounds = array<i64: 1, 64, 32>}, {transform_indices = @transform_13, window_bounds = array<i64: 1, 1, 32>}, {transform_indices = @transform_14, window_bounds = array<i64: 1, 1, 32>}, {transform_indices = @transform_15, window_bounds = array<i64: 1, 1, 32>}, {pipeline_mode = #tpu.pipeline_mode<synchronous>, transform_indices = @transform_16, window_bounds = array<i64: 32, 128>}, {pipeline_mode = #tpu.pipeline_mode<synchronous>, transform_indices = @transform_17, window_bounds = array<i64: 1, 128>}, {transform_indices = @transform_18, window_bounds = array<i64: 1, 8, 128>}]} {
    %c0_i32 = arith.constant 0 : i32
    %0 = arith.cmpi eq, %arg1, %c0_i32 : i32
    %1 = arith.extui %0 : i1 to i32
    %c0_i32_0 = arith.constant 0 : i32
    %2 = arith.cmpi ne, %1, %c0_i32_0 : i32
    scf.if %2 {
      %c0_65 = arith.constant 0 : index
      %c0_66 = arith.constant 0 : index
      %c0_67 = arith.constant 0 : index
      %148 = vector.load %arg2[%c0_65, %c0_66, %c0_67] : memref<1x8x32xbf16, #tpu.memory_space<vmem>>, vector<1x8x32xbf16>
      %149 = vector.shape_cast %148 : vector<1x8x32xbf16> to vector<8x32xbf16>
      %150 = arith.extf %149 : vector<8x32xbf16> to vector<8x32xf32>
      %c0_68 = arith.constant 0 : index
      %c0_69 = arith.constant 0 : index
      %151 = vector.load %arg4[%c0_68, %c0_69] : memref<1x32xf32, #tpu.memory_space<vmem>>, vector<1x32xf32>
      %c0_70 = arith.constant 0 : index
      %c0_71 = arith.constant 0 : index
      %152 = vector.load %arg5[%c0_70, %c0_71] : memref<1x32xf32, #tpu.memory_space<vmem>>, vector<1x32xf32>
      %cst_72 = arith.constant dense<0.000000e+00> : vector<8xf32>
      %153 = vector.multi_reduction <add>, %150, %cst_72 [1] : vector<8x32xf32> to vector<8xf32>
      %154 = vector.shape_cast %153 : vector<8xf32> to vector<8x1xf32>
      %cst_73 = arith.constant 3.200000e+01 : f32
      %155 = vector.broadcast %cst_73 : f32 to vector<8x1xf32>
      %156 = arith.divf %154, %155 : vector<8x1xf32>
      %157 = vector.broadcast %156 : vector<8x1xf32> to vector<8x32xf32>
      %158 = arith.subf %150, %157 : vector<8x32xf32>
      %159 = arith.mulf %158, %158 : vector<8x32xf32>
      %cst_74 = arith.constant dense<0.000000e+00> : vector<8xf32>
      %160 = vector.multi_reduction <add>, %159, %cst_74 [1] : vector<8x32xf32> to vector<8xf32>
      %161 = vector.shape_cast %160 : vector<8xf32> to vector<8x1xf32>
      %cst_75 = arith.constant 3.200000e+01 : f32
      %162 = vector.broadcast %cst_75 : f32 to vector<8x1xf32>
      %163 = arith.divf %161, %162 : vector<8x1xf32>
      %164 = vector.broadcast %156 : vector<8x1xf32> to vector<8x32xf32>
      %165 = arith.subf %150, %164 : vector<8x32xf32>
      %cst_76 = arith.constant 9.99999996E-13 : f32
      %166 = vector.broadcast %cst_76 : f32 to vector<8x1xf32>
      %167 = arith.addf %163, %166 : vector<8x1xf32>
      %168 = math.rsqrt %167 : vector<8x1xf32>
      %169 = vector.broadcast %168 : vector<8x1xf32> to vector<8x32xf32>
      %170 = arith.mulf %165, %169 : vector<8x32xf32>
      %171 = vector.broadcast %151 : vector<1x32xf32> to vector<8x32xf32>
      %172 = arith.mulf %170, %171 : vector<8x32xf32>
      %173 = vector.broadcast %152 : vector<1x32xf32> to vector<8x32xf32>
      %174 = arith.addf %172, %173 : vector<8x32xf32>
      %c0_77 = arith.constant 0 : index
      %c0_78 = arith.constant 0 : index
      %175 = vector.load %arg21[%c0_77, %c0_78] : memref<8x32xf32, #tpu.memory_space<vmem>>, vector<8x32xf32>
      tpu.vector_store %arg21[%c0_77, %c0_78], %174 {strides = array<i32>} : memref<8x32xf32, #tpu.memory_space<vmem>>, vector<8x32xf32>,
    } else {
    }
    %c0 = arith.constant 0 : index
    %c0_1 = arith.constant 0 : index
    %3 = vector.load %arg21[%c0, %c0_1] : memref<8x32xf32, #tpu.memory_space<vmem>>, vector<8x32xf32>
    %c0_2 = arith.constant 0 : index
    %c0_3 = arith.constant 0 : index
    %c0_4 = arith.constant 0 : index
    %4 = vector.load %arg3[%c0_2, %c0_3, %c0_4] : memref<1x1x8xf32, #tpu.memory_space<vmem>>, vector<1x1x8xf32>
    %5 = vector.shape_cast %4 : vector<1x1x8xf32> to vector<1x8xf32>
    %6 = arith.truncf %3 : vector<8x32xf32> to vector<8x32xbf16>
    %c0_5 = arith.constant 0 : index
    %c0_6 = arith.constant 0 : index
    %c0_7 = arith.constant 0 : index
    %7 = vector.load %arg6[%c0_5, %c0_6, %c0_7] : memref<1x32x96xbf16, #tpu.memory_space<vmem>>, vector<1x32x96xbf16>
    %8 = vector.shape_cast %7 : vector<1x32x96xbf16> to vector<32x96xbf16>
    %cst = arith.constant dense<0.000000e+00> : vector<8x96xf32>
    %9 = tpu.matmul %6, %8, %cst {dimension_numbers = #tpu.dot_dimension_numbers<[1], [0], [0], [1], [0, 0, 1, 1], [], []>} : vector<8x32xbf16>, vector<32x96xbf16>, vector<8x96xf32> -> vector<8x96xf32>
    %c0_8 = arith.constant 0 : index
    %c0_9 = arith.constant 0 : index
    %c0_10 = arith.constant 0 : index
    %10 = vector.load %arg7[%c0_8, %c0_9, %c0_10] : memref<1x1x96xf32, #tpu.memory_space<vmem>>, vector<1x1x96xf32>
    %11 = vector.shape_cast %10 : vector<1x1x96xf32> to vector<1x96xf32>
    %12 = vector.broadcast %11 : vector<1x96xf32> to vector<8x96xf32>
    %13 = arith.addf %9, %12 : vector<8x96xf32>
    %14 = vector.extract_strided_slice %13 {offsets = [0, 0], sizes = [8, 16], strides = [1, 1]} : vector<8x96xf32> to vector<8x16xf32>
    %15 = vector.extract_strided_slice %13 {offsets = [0, 16], sizes = [8, 16], strides = [1, 1]} : vector<8x96xf32> to vector<8x16xf32>
    %16 = vector.shape_cast %14 : vector<8x16xf32> to vector<1x8x16xf32>
    %17 = vector.shape_cast %15 : vector<8x16xf32> to vector<1x8x16xf32>
    %18 = tpu.concatenate %16, %17 in 0 : vector<1x8x16xf32>, vector<1x8x16xf32> -> vector<2x8x16xf32>
    %19 = arith.truncf %18 : vector<2x8x16xf32> to vector<2x8x16xbf16>
    %20 = vector.extract_strided_slice %13 {offsets = [0, 32], sizes = [8, 16], strides = [1, 1]} : vector<8x96xf32> to vector<8x16xf32>
    %21 = vector.extract_strided_slice %13 {offsets = [0, 48], sizes = [8, 16], strides = [1, 1]} : vector<8x96xf32> to vector<8x16xf32>
    %22 = vector.shape_cast %20 : vector<8x16xf32> to vector<1x8x16xf32>
    %23 = vector.shape_cast %21 : vector<8x16xf32> to vector<1x8x16xf32>
    %24 = tpu.concatenate %22, %23 in 0 : vector<1x8x16xf32>, vector<1x8x16xf32> -> vector<2x8x16xf32>
    %25 = arith.truncf %24 : vector<2x8x16xf32> to vector<2x8x16xbf16>
    %26 = vector.extract_strided_slice %13 {offsets = [0, 64], sizes = [8, 16], strides = [1, 1]} : vector<8x96xf32> to vector<8x16xf32>
    %27 = vector.extract_strided_slice %13 {offsets = [0, 80], sizes = [8, 16], strides = [1, 1]} : vector<8x96xf32> to vector<8x16xf32>
    %28 = vector.shape_cast %26 : vector<8x16xf32> to vector<1x8x16xf32>
    %29 = vector.shape_cast %27 : vector<8x16xf32> to vector<1x8x16xf32>
    %30 = tpu.concatenate %28, %29 in 0 : vector<1x8x16xf32>, vector<1x8x16xf32> -> vector<2x8x16xf32>
    %31 = arith.truncf %30 : vector<2x8x16xf32> to vector<2x8x16xbf16>
    "tpu.trace_start"() <{level = 10 : i32, message = "hqd,hkd->hqk"}> : () -> ()
    %cst_11 = arith.constant dense<0.000000e+00> : vector<2x8x8xf32>
    %32 = tpu.matmul %19, %25, %cst_11 {dimension_numbers = #tpu.dot_dimension_numbers<[2], [2], [1], [1], [0, 0, 0, 1, 1, 1], [0], [0]>} : vector<2x8x16xbf16>, vector<2x8x16xbf16>, vector<2x8x8xf32> -> vector<2x8x8xf32>
    "tpu.trace_stop"() : () -> ()
    %33 = vector.shape_cast %5 : vector<1x8xf32> to vector<1x1x8xf32>
    %34 = vector.broadcast %33 : vector<1x1x8xf32> to vector<2x8x8xf32>
    %35 = arith.addf %32, %34 : vector<2x8x8xf32>
    %cst_12 = arith.constant dense<0xFF800000> : vector<2x8xf32>
    %36 = vector.multi_reduction <maximumf>, %35, %cst_12 [2] : vector<2x8x8xf32> to vector<2x8xf32>
    %37 = vector.shape_cast %36 : vector<2x8xf32> to vector<2x8x1xf32>
    %38 = vector.broadcast %37 : vector<2x8x1xf32> to vector<2x8x8xf32>
    %39 = arith.subf %35, %38 : vector<2x8x8xf32>
    %40 = math.exp %39 : vector<2x8x8xf32>
    %cst_13 = arith.constant dense<0.000000e+00> : vector<2x8xf32>
    %41 = vector.multi_reduction <add>, %40, %cst_13 [2] : vector<2x8x8xf32> to vector<2x8xf32>
    %42 = vector.shape_cast %41 : vector<2x8xf32> to vector<2x8x1xf32>
    %43 = tpu.reciprocal %42 {approx = true} : vector<2x8x1xf32> -> vector<2x8x1xf32>
    %44 = vector.broadcast %43 : vector<2x8x1xf32> to vector<2x8x8xf32>
    %45 = arith.mulf %40, %44 : vector<2x8x8xf32>
    %46 = arith.truncf %45 : vector<2x8x8xf32> to vector<2x8x8xbf16>
    "tpu.trace_start"() <{level = 10 : i32, message = "hqk,hkd->hqd"}> : () -> ()
    %cst_14 = arith.constant dense<0.000000e+00> : vector<2x8x16xf32>
    %47 = tpu.matmul %46, %31, %cst_14 {dimension_numbers = #tpu.dot_dimension_numbers<[2], [1], [1], [2], [0, 0, 0, 1, 1, 2], [0], [0]>} : vector<2x8x8xbf16>, vector<2x8x16xbf16>, vector<2x8x16xf32> -> vector<2x8x16xf32>
    "tpu.trace_stop"() : () -> ()
    %48 = vector.extract_strided_slice %47 {offsets = [0, 0, 0], sizes = [1, 8, 16], strides = [1, 1, 1]} : vector<2x8x16xf32> to vector<1x8x16xf32>
    %49 = vector.shape_cast %48 : vector<1x8x16xf32> to vector<8x16xf32>
    %50 = vector.extract_strided_slice %47 {offsets = [1, 0, 0], sizes = [1, 8, 16], strides = [1, 1, 1]} : vector<2x8x16xf32> to vector<1x8x16xf32>
    %51 = vector.shape_cast %50 : vector<1x8x16xf32> to vector<8x16xf32>
    %52 = tpu.concatenate %49, %51 in 1 : vector<8x16xf32>, vector<8x16xf32> -> vector<8x32xf32>
    %53 = arith.truncf %52 : vector<8x32xf32> to vector<8x32xbf16>
    %c0_15 = arith.constant 0 : index
    %c0_16 = arith.constant 0 : index
    %c0_17 = arith.constant 0 : index
    %54 = vector.load %arg8[%c0_15, %c0_16, %c0_17] : memref<1x32x32xbf16, #tpu.memory_space<vmem>>, vector<1x32x32xbf16>
    %55 = vector.shape_cast %54 : vector<1x32x32xbf16> to vector<32x32xbf16>
    %cst_18 = arith.constant dense<0.000000e+00> : vector<8x32xf32>
    %56 = tpu.matmul %53, %55, %cst_18 {dimension_numbers = #tpu.dot_dimension_numbers<[1], [0], [0], [1], [0, 0, 1, 1], [], []>} : vector<8x32xbf16>, vector<32x32xbf16>, vector<8x32xf32> -> vector<8x32xf32>
    %c0_19 = arith.constant 0 : index
    %c0_20 = arith.constant 0 : index
    %c0_21 = arith.constant 0 : index
    %57 = vector.load %arg9[%c0_19, %c0_20, %c0_21] : memref<1x1x32xf32, #tpu.memory_space<vmem>>, vector<1x1x32xf32>
    %58 = vector.shape_cast %57 : vector<1x1x32xf32> to vector<1x32xf32>
    %59 = vector.broadcast %58 : vector<1x32xf32> to vector<8x32xf32>
    %60 = arith.addf %56, %59 : vector<8x32xf32>
    %61 = arith.addf %60, %3 : vector<8x32xf32>
    %c0_22 = arith.constant 0 : index
    %c0_23 = arith.constant 0 : index
    %c0_24 = arith.constant 0 : index
    %62 = vector.load %arg10[%c0_22, %c0_23, %c0_24] : memref<1x1x32xf32, #tpu.memory_space<vmem>>, vector<1x1x32xf32>
    %63 = vector.shape_cast %62 : vector<1x1x32xf32> to vector<1x32xf32>
    %c0_25 = arith.constant 0 : index
    %c0_26 = arith.constant 0 : index
    %c0_27 = arith.constant 0 : index
    %64 = vector.load %arg11[%c0_25, %c0_26, %c0_27] : memref<1x1x32xf32, #tpu.memory_space<vmem>>, vector<1x1x32xf32>
    %65 = vector.shape_cast %64 : vector<1x1x32xf32> to vector<1x32xf32>
    %cst_28 = arith.constant dense<0.000000e+00> : vector<8xf32>
    %66 = vector.multi_reduction <add>, %61, %cst_28 [1] : vector<8x32xf32> to vector<8xf32>
    %67 = vector.shape_cast %66 : vector<8xf32> to vector<8x1xf32>
    %cst_29 = arith.constant 3.200000e+01 : f32
    %68 = vector.broadcast %cst_29 : f32 to vector<8x1xf32>
    %69 = arith.divf %67, %68 : vector<8x1xf32>
    %70 = vector.broadcast %69 : vector<8x1xf32> to vector<8x32xf32>
    %71 = arith.subf %61, %70 : vector<8x32xf32>
    %72 = arith.mulf %71, %71 : vector<8x32xf32>
    %cst_30 = arith.constant dense<0.000000e+00> : vector<8xf32>
    %73 = vector.multi_reduction <add>, %72, %cst_30 [1] : vector<8x32xf32> to vector<8xf32>
    %74 = vector.shape_cast %73 : vector<8xf32> to vector<8x1xf32>
    %cst_31 = arith.constant 3.200000e+01 : f32
    %75 = vector.broadcast %cst_31 : f32 to vector<8x1xf32>
    %76 = arith.divf %74, %75 : vector<8x1xf32>
    %77 = vector.broadcast %69 : vector<8x1xf32> to vector<8x32xf32>
    %78 = arith.subf %61, %77 : vector<8x32xf32>
    %cst_32 = arith.constant 9.99999996E-13 : f32
    %79 = vector.broadcast %cst_32 : f32 to vector<8x1xf32>
    %80 = arith.addf %76, %79 : vector<8x1xf32>
    %81 = math.rsqrt %80 : vector<8x1xf32>
    %82 = vector.broadcast %81 : vector<8x1xf32> to vector<8x32xf32>
    %83 = arith.mulf %78, %82 : vector<8x32xf32>
    %84 = vector.broadcast %63 : vector<1x32xf32> to vector<8x32xf32>
    %85 = arith.mulf %83, %84 : vector<8x32xf32>
    %86 = vector.broadcast %65 : vector<1x32xf32> to vector<8x32xf32>
    %87 = arith.addf %85, %86 : vector<8x32xf32>
    %88 = arith.truncf %87 : vector<8x32xf32> to vector<8x32xbf16>
    %c0_33 = arith.constant 0 : index
    %c0_34 = arith.constant 0 : index
    %c0_35 = arith.constant 0 : index
    %89 = vector.load %arg12[%c0_33, %c0_34, %c0_35] : memref<1x32x64xbf16, #tpu.memory_space<vmem>>, vector<1x32x64xbf16>
    %90 = vector.shape_cast %89 : vector<1x32x64xbf16> to vector<32x64xbf16>
    %cst_36 = arith.constant dense<0.000000e+00> : vector<8x64xf32>
    %91 = tpu.matmul %88, %90, %cst_36 {dimension_numbers = #tpu.dot_dimension_numbers<[1], [0], [0], [1], [0, 0, 1, 1], [], []>} : vector<8x32xbf16>, vector<32x64xbf16>, vector<8x64xf32> -> vector<8x64xf32>
    %c0_37 = arith.constant 0 : index
    %c0_38 = arith.constant 0 : index
    %c0_39 = arith.constant 0 : index
    %92 = vector.load %arg13[%c0_37, %c0_38, %c0_39] : memref<1x1x64xf32, #tpu.memory_space<vmem>>, vector<1x1x64xf32>
    %93 = vector.shape_cast %92 : vector<1x1x64xf32> to vector<1x64xf32>
    %94 = vector.broadcast %93 : vector<1x64xf32> to vector<8x64xf32>
    %95 = arith.addf %91, %94 : vector<8x64xf32>
    %cst_40 = arith.constant 5.000000e-01 : f32
    %96 = vector.broadcast %cst_40 : f32 to vector<8x64xf32>
    %97 = arith.mulf %96, %95 : vector<8x64xf32>
    %cst_41 = arith.constant 4.471500e-02 : f32
    %98 = vector.broadcast %cst_41 : f32 to vector<8x64xf32>
    %99 = arith.mulf %98, %95 : vector<8x64xf32>
    %100 = arith.mulf %99, %95 : vector<8x64xf32>
    %101 = arith.mulf %100, %95 : vector<8x64xf32>
    %102 = arith.addf %95, %101 : vector<8x64xf32>
    %cst_42 = arith.constant 0.797884583 : f32
    %103 = vector.broadcast %cst_42 : f32 to vector<8x64xf32>
    %104 = arith.mulf %103, %102 : vector<8x64xf32>
    %105 = math.tanh %104 : vector<8x64xf32>
    %cst_43 = arith.constant 1.000000e+00 : f32
    %106 = vector.broadcast %cst_43 : f32 to vector<8x64xf32>
    %107 = arith.addf %106, %105 : vector<8x64xf32>
    %108 = arith.mulf %97, %107 : vector<8x64xf32>
    %109 = arith.truncf %108 : vector<8x64xf32> to vector<8x64xbf16>
    %c0_44 = arith.constant 0 : index
    %c0_45 = arith.constant 0 : index
    %c0_46 = arith.constant 0 : index
    %110 = vector.load %arg14[%c0_44, %c0_45, %c0_46] : memref<1x64x32xbf16, #tpu.memory_space<vmem>>, vector<1x64x32xbf16>
    %111 = vector.shape_cast %110 : vector<1x64x32xbf16> to vector<64x32xbf16>
    %cst_47 = arith.constant dense<0.000000e+00> : vector<8x32xf32>
    %112 = tpu.matmul %109, %111, %cst_47 {dimension_numbers = #tpu.dot_dimension_numbers<[1], [0], [0], [1], [0, 0, 1, 1], [], []>} : vector<8x64xbf16>, vector<64x32xbf16>, vector<8x32xf32> -> vector<8x32xf32>
    %c0_48 = arith.constant 0 : index
    %c0_49 = arith.constant 0 : index
    %c0_50 = arith.constant 0 : index
    %113 = vector.load %arg15[%c0_48, %c0_49, %c0_50] : memref<1x1x32xf32, #tpu.memory_space<vmem>>, vector<1x1x32xf32>
    %114 = vector.shape_cast %113 : vector<1x1x32xf32> to vector<1x32xf32>
    %115 = vector.broadcast %114 : vector<1x32xf32> to vector<8x32xf32>
    %116 = arith.addf %112, %115 : vector<8x32xf32>
    %117 = arith.addf %116, %87 : vector<8x32xf32>
    %c0_51 = arith.constant 0 : index
    %c0_52 = arith.constant 0 : index
    %c0_53 = arith.constant 0 : index
    %118 = vector.load %arg16[%c0_51, %c0_52, %c0_53] : memref<1x1x32xf32, #tpu.memory_space<vmem>>, vector<1x1x32xf32>
    %119 = vector.shape_cast %118 : vector<1x1x32xf32> to vector<1x32xf32>
    %c0_54 = arith.constant 0 : index
    %c0_55 = arith.constant 0 : index
    %c0_56 = arith.constant 0 : index
    %120 = vector.load %arg17[%c0_54, %c0_55, %c0_56] : memref<1x1x32xf32, #tpu.memory_space<vmem>>, vector<1x1x32xf32>
    %121 = vector.shape_cast %120 : vector<1x1x32xf32> to vector<1x32xf32>
    %cst_57 = arith.constant dense<0.000000e+00> : vector<8xf32>
    %122 = vector.multi_reduction <add>, %117, %cst_57 [1] : vector<8x32xf32> to vector<8xf32>
    %123 = vector.shape_cast %122 : vector<8xf32> to vector<8x1xf32>
    %cst_58 = arith.constant 3.200000e+01 : f32
    %124 = vector.broadcast %cst_58 : f32 to vector<8x1xf32>
    %125 = arith.divf %123, %124 : vector<8x1xf32>
    %126 = vector.broadcast %125 : vector<8x1xf32> to vector<8x32xf32>
    %127 = arith.subf %117, %126 : vector<8x32xf32>
    %128 = arith.mulf %127, %127 : vector<8x32xf32>
    %cst_59 = arith.constant dense<0.000000e+00> : vector<8xf32>
    %129 = vector.multi_reduction <add>, %128, %cst_59 [1] : vector<8x32xf32> to vector<8xf32>
    %130 = vector.shape_cast %129 : vector<8xf32> to vector<8x1xf32>
    %cst_60 = arith.constant 3.200000e+01 : f32
    %131 = vector.broadcast %cst_60 : f32 to vector<8x1xf32>
    %132 = arith.divf %130, %131 : vector<8x1xf32>
    %133 = vector.broadcast %125 : vector<8x1xf32> to vector<8x32xf32>
    %134 = arith.subf %117, %133 : vector<8x32xf32>
    %cst_61 = arith.constant 9.99999996E-13 : f32
    %135 = vector.broadcast %cst_61 : f32 to vector<8x1xf32>
    %136 = arith.addf %132, %135 : vector<8x1xf32>
    %137 = math.rsqrt %136 : vector<8x1xf32>
    %138 = vector.broadcast %137 : vector<8x1xf32> to vector<8x32xf32>
    %139 = arith.mulf %134, %138 : vector<8x32xf32>
    %140 = vector.broadcast %119 : vector<1x32xf32> to vector<8x32xf32>
    %141 = arith.mulf %139, %140 : vector<8x32xf32>
    %142 = vector.broadcast %121 : vector<1x32xf32> to vector<8x32xf32>
    %143 = arith.addf %141, %142 : vector<8x32xf32>
    %c0_62 = arith.constant 0 : index
    %c0_63 = arith.constant 0 : index
    %144 = vector.load %arg21[%c0_62, %c0_63] : memref<8x32xf32, #tpu.memory_space<vmem>>, vector<8x32xf32>
    tpu.vector_store %arg21[%c0_62, %c0_63], %143 {strides = array<i32>} : memref<8x32xf32, #tpu.memory_space<vmem>>, vector<8x32xf32>,
    %c1_i32 = arith.constant 1 : i32
    %145 = arith.cmpi eq, %arg1, %c1_i32 : i32
    %146 = arith.extui %145 : i1 to i32
    %c0_i32_64 = arith.constant 0 : i32
    %147 = arith.cmpi ne, %146, %c0_i32_64 : i32
    scf.if %147 {
      %148 = arith.truncf %143 : vector<8x32xf32> to vector<8x32xbf16>
      %c0_65 = arith.constant 0 : index
      %c0_66 = arith.constant 0 : index
      %149 = vector.load %arg18[%c0_65, %c0_66] : memref<32x128xbf16, #tpu.memory_space<vmem>>, vector<32x128xbf16>
      %cst_67 = arith.constant dense<0.000000e+00> : vector<8x128xf32>
      %150 = tpu.matmul %148, %149, %cst_67 {dimension_numbers = #tpu.dot_dimension_numbers<[1], [0], [0], [1], [0, 0, 1, 1], [], []>} : vector<8x32xbf16>, vector<32x128xbf16>, vector<8x128xf32> -> vector<8x128xf32>
      %c0_68 = arith.constant 0 : index
      %c0_69 = arith.constant 0 : index
      %151 = vector.load %arg19[%c0_68, %c0_69] : memref<1x128xf32, #tpu.memory_space<vmem>>, vector<1x128xf32>
      %152 = vector.broadcast %151 : vector<1x128xf32> to vector<8x128xf32>
      %153 = arith.addf %150, %152 : vector<8x128xf32>
      %c0_70 = arith.constant 0 : index
      %c0_71 = arith.constant 0 : index
      %c0_72 = arith.constant 0 : index
      %154 = vector.load %arg20[%c0_70, %c0_71, %c0_72] : memref<1x8x128xf32, #tpu.memory_space<vmem>>, vector<1x8x128xf32>
      %155 = vector.shape_cast %154 : vector<1x8x128xf32> to vector<8x128xf32>
      %156 = vector.shape_cast %153 : vector<8x128xf32> to vector<1x8x128xf32>
      tpu.vector_store %arg20[%c0_70, %c0_71, %c0_72], %156 {strides = array<i32>} : memref<1x8x128xf32, #tpu.memory_space<vmem>>, vector<1x8x128xf32>,
    } else {
    }
    return
  }
  func.func @transform_0(%arg0: i32, %arg1: i32) -> (i32, i32, i32) {
    %c0_i32 = arith.constant 0 : i32
    %c0_i32_0 = arith.constant 0 : i32
    %c0_i32_1 = arith.constant 0 : i32
    return %arg0, %c0_i32, %c0_i32_0 : i32, i32, i32
  }
  func.func @transform_1(%arg0: i32, %arg1: i32) -> (i32, i32, i32) {
    %c0_i32 = arith.constant 0 : i32
    %c0_i32_0 = arith.constant 0 : i32
    %c0_i32_1 = arith.constant 0 : i32
    return %arg0, %c0_i32, %c0_i32_0 : i32, i32, i32
  }
  func.func @transform_2(%arg0: i32, %arg1: i32) -> (i32, i32) {
    %c0_i32 = arith.constant 0 : i32
    %c0_i32_0 = arith.constant 0 : i32
    %c0_i32_1 = arith.constant 0 : i32
    return %c0_i32, %c0_i32_0 : i32, i32
  }
  func.func @transform_3(%arg0: i32, %arg1: i32) -> (i32, i32) {
    %c0_i32 = arith.constant 0 : i32
    %c0_i32_0 = arith.constant 0 : i32
    %c0_i32_1 = arith.constant 0 : i32
    return %c0_i32, %c0_i32_0 : i32, i32
  }
  func.func @transform_4(%arg0: i32, %arg1: i32) -> (i32, i32, i32) {
    %c0_i32 = arith.constant 0 : i32
    %c0_i32_0 = arith.constant 0 : i32
    %c0_i32_1 = arith.constant 0 : i32
    return %arg1, %c0_i32, %c0_i32_0 : i32, i32, i32
  }
  func.func @transform_5(%arg0: i32, %arg1: i32) -> (i32, i32, i32) {
    %c0_i32 = arith.constant 0 : i32
    %c0_i32_0 = arith.constant 0 : i32
    %c0_i32_1 = arith.constant 0 : i32
    return %arg1, %c0_i32, %c0_i32_0 : i32, i32, i32
  }
  func.func @transform_6(%arg0: i32, %arg1: i32) -> (i32, i32, i32) {
    %c0_i32 = arith.constant 0 : i32
    %c0_i32_0 = arith.constant 0 : i32
    %c0_i32_1 = arith.constant 0 : i32
    return %arg1, %c0_i32, %c0_i32_0 : i32, i32, i32
  }
  func.func @transform_7(%arg0: i32, %arg1: i32) -> (i32, i32, i32) {
    %c0_i32 = arith.constant 0 : i32
    %c0_i32_0 = arith.constant 0 : i32
    %c0_i32_1 = arith.constant 0 : i32
    return %arg1, %c0_i32, %c0_i32_0 : i32, i32, i32
  }
  func.func @transform_8(%arg0: i32, %arg1: i32) -> (i32, i32, i32) {
    %c0_i32 = arith.constant 0 : i32
    %c0_i32_0 = arith.constant 0 : i32
    %c0_i32_1 = arith.constant 0 : i32
    return %arg1, %c0_i32, %c0_i32_0 : i32, i32, i32
  }
  func.func @transform_9(%arg0: i32, %arg1: i32) -> (i32, i32, i32) {
    %c0_i32 = arith.constant 0 : i32
    %c0_i32_0 = arith.constant 0 : i32
    %c0_i32_1 = arith.constant 0 : i32
    return %arg1, %c0_i32, %c0_i32_0 : i32, i32, i32
  }
  func.func @transform_10(%arg0: i32, %arg1: i32) -> (i32, i32, i32) {
    %c0_i32 = arith.constant 0 : i32
    %c0_i32_0 = arith.constant 0 : i32
    %c0_i32_1 = arith.constant 0 : i32
    return %arg1, %c0_i32, %c0_i32_0 : i32, i32, i32
  }
  func.func @transform_11(%arg0: i32, %arg1: i32) -> (i32, i32, i32) {
    %c0_i32 = arith.constant 0 : i32
    %c0_i32_0 = arith.constant 0 : i32
    %c0_i32_1 = arith.constant 0 : i32
    return %arg1, %c0_i32, %c0_i32_0 : i32, i32, i32
  }
  func.func @transform_12(%arg0: i32, %arg1: i32) -> (i32, i32, i32) {
    %c0_i32 = arith.constant 0 : i32
    %c0_i32_0 = arith.constant 0 : i32
    %c0_i32_1 = arith.constant 0 : i32
    return %arg1, %c0_i32, %c0_i32_0 : i32, i32, i32
  }
  func.func @transform_13(%arg0: i32, %arg1: i32) -> (i32, i32, i32) {
    %c0_i32 = arith.constant 0 : i32
    %c0_i32_0 = arith.constant 0 : i32
    %c0_i32_1 = arith.constant 0 : i32
    return %arg1, %c0_i32, %c0_i32_0 : i32, i32, i32
  }
  func.func @transform_14(%arg0: i32, %arg1: i32) -> (i32, i32, i32) {
    %c0_i32 = arith.constant 0 : i32
    %c0_i32_0 = arith.constant 0 : i32
    %c0_i32_1 = arith.constant 0 : i32
    return %arg1, %c0_i32, %c0_i32_0 : i32, i32, i32
  }
  func.func @transform_15(%arg0: i32, %arg1: i32) -> (i32, i32, i32) {
    %c0_i32 = arith.constant 0 : i32
    %c0_i32_0 = arith.constant 0 : i32
    %c0_i32_1 = arith.constant 0 : i32
    return %arg1, %c0_i32, %c0_i32_0 : i32, i32, i32
  }
  func.func @transform_16(%arg0: i32, %arg1: i32) -> (i32, i32) {
    %c0_i32 = arith.constant 0 : i32
    %c0_i32_0 = arith.constant 0 : i32
    %c0_i32_1 = arith.constant 0 : i32
    return %c0_i32, %c0_i32_0 : i32, i32
  }
  func.func @transform_17(%arg0: i32, %arg1: i32) -> (i32, i32) {
    %c0_i32 = arith.constant 0 : i32
    %c0_i32_0 = arith.constant 0 : i32
    %c0_i32_1 = arith.constant 0 : i32
    return %c0_i32, %c0_i32_0 : i32, i32
  }
  func.func @transform_18(%arg0: i32, %arg1: i32) -> (i32, i32, i32) {
    %c0_i32 = arith.constant 0 : i32
    %c0_i32_0 = arith.constant 0 : i32
    %c0_i32_1 = arith.constant 0 : i32
    return %arg0, %c0_i32, %c0_i32_0 : i32, i32, i32
  }
}

</mosaic_0001>

<bundles_post_ra>
// kernel: tpu_custom_call.1
= control target key start
LH: loop header
LB: loop body
LE: loop exit
PB: predicated region body
PF: predicated region fallthrough
CT: control target
= control target key end

     0   :  { %s3507_s0 = inlined_call_operand.hbm [shape: bf16[2,8,32], index: 0, kind: input, shape index: {}]   ;;  %s3508_s1 = inlined_call_operand.hbm [shape: f32[2,1,8], index: 1, kind: input, shape index: {}]   ;;  %s3509_s2 = inlined_call_operand.vmem [shape: f32[1,32], index: 2, kind: input, shape index: {}]   ;;  %s3510_s3 = inlined_call_operand.hbm [shape: f32[1,32], index: 3, kind: input, shape index: {}]   ;;  %s3511_s4 = inlined_call_operand.vmem [shape: bf16[2,32,96], index: 4, kind: input, shape index: {}]   ;;  %s3512_s5 = inlined_call_operand.hbm [shape: f32[2,1,96], index: 5, kind: input, shape index: {}]   ;;  %s3513_s6 = inlined_call_operand.vmem [shape: bf16[2,32,32], index: 6, kind: input, shape index: {}]   ;;  %s3514_s7 = inlined_call_operand.hbm [shape: f32[2,1,32], index: 7, kind: input, shape index: {}]   ;;  %s3515_s8 = inlined_call_operand.hbm [shape: f32[2,1,32], index: 8, kind: input, shape index: {}]   ;;  %s3516_s9 = inlined_call_operand.hbm [shape: f32[2,1,32], index: 9, kind: input, shape index: {}]   ;;  %s3517_s10 = inlined_call_operand.vmem [shape: bf16[2,32,64], index: 10, kind: input, shape index: {}]   ;;  %s3518_s11 = inlined_call_operand.hbm [shape: f32[2,1,64], index: 11, kind: input, shape index: {}]   ;;  %s3519_s12 = inlined_call_operand.vmem [shape: bf16[2,64,32], index: 12, kind: input, shape index: {}]   ;;  %s3520_s13 = inlined_call_operand.hbm [shape: f32[2,1,32], index: 13, kind: input, shape index: {}]   ;;  %s3521_s14 = inlined_call_operand.vmem [shape: f32[2,1,32], index: 14, kind: input, shape index: {}]   ;;  %s3522_s15 = inlined_call_operand.vmem [shape: f32[2,1,32], index: 15, kind: input, shape index: {}]   ;;  %s3523_s16 = inlined_call_operand.vmem [shape: bf16[32,128], index: 16, kind: input, shape index: {}]   ;;  %s3524_s17 = inlined_call_operand.vmem [shape: f32[1,128], index: 17, kind: input, shape index: {}]   ;;  %s3525_s18 = inlined_call_operand.hbm [shape: f32[2,8,128], index: 18, kind: output, shape index: {}]  }
   0x1   :  { %3560 = sst [smem:[#allocation41_spill]] %s3507_s0 }
   0x2   :  { %3561 = sst [smem:[#allocation42_spill]] %s3508_s1 }
   0x3   :  { %3562 = sst [smem:[#allocation43_spill]] %s3509_s2 }
   0x4   :  { %3563 = sst [smem:[#allocation44_spill]] %s3510_s3 }
   0x5   :  { %3564 = sst [smem:[#allocation45_spill]] %s3511_s4 }
   0x6   :  { %3565 = sst [smem:[#allocation46_spill]] %s3512_s5 }
   0x7   :  { %3566 = sst [smem:[#allocation47_spill]] %s3513_s6 }
   0x8   :  { %3567 = sst [smem:[#allocation48_spill]] %s3514_s7 }
   0x9   :  { %3568 = sst [smem:[#allocation49_spill]] %s3515_s8 }
   0xa   :  { %3569 = sst [smem:[#allocation50_spill]] %s3516_s9 }
   0xb   :  { %3570 = sst [smem:[#allocation51_spill]] %s3517_s10 }
   0xc   :  { %3571 = sst [smem:[#allocation52_spill]] %s3518_s11 }
   0xd   :  { %3572 = sst [smem:[#allocation53_spill]] %s3519_s12 }
   0xe   :  { %3573 = sst [smem:[#allocation54_spill]] %s3520_s13 }
   0xf   :  { %3574 = sst [smem:[#allocation55_spill]] %s3521_s14 }
  0x10   :  { %3575 = sst [smem:[#allocation56_spill]] %s3522_s15 }
  0x11   :  { %3576 = sst [smem:[#allocation57_spill]] %s3523_s16 }
  0x12   :  { %3577 = sst [smem:[#allocation58_spill]] %s3524_s17 }
  0x13   :  { %3578 = sst [smem:[#allocation59_spill]] %s3525_s18 }
  0x14   :  { %23 = vsyncpa [#allocation4], 0 }
  0x15   :  { %25 = vsyncpa [#allocation4 + $0x1], 0 }
  0x16   :  { %26 = vsyncpa [#allocation7], 0 }
  0x17   :  { %28 = vsyncpa [#allocation7 + $0x1], 0 }
  0x18   :  { %29 = vsyncpa [#allocation10], 0 }
  0x19   :  { %31 = vsyncpa [#allocation10 + $0x1], 0 }
  0x1a   :  { %32 = vsyncpa [#allocation13], 0 }
  0x1b   :  { %34 = vsyncpa [#allocation13 + $0x1], 0 }
  0x1c   :  { %35 = vsyncpa [#allocation16], 0 }
  0x1d   :  { %37 = vsyncpa [#allocation16 + $0x1], 0 }
  0x1e   :  { %38 = vsyncpa [#allocation5], 0 }
  0x1f   :  { %40 = vsyncpa [#allocation5 + $0x1], 0  ;;  %s2832_s27 = smov 0   ;;  %s2834_s28 = smov 0  }
  0x20   :  { %s2836_s29 = smov 0   ;;  %s2838_s30 = smov 0  }
  0x21   :  { %s2840_s0 = smov 0   ;;  %s2842_s19 = smov 0  }
  0x22   :  { %s2844_s1 = smov 0   ;;  %s2846_s20 = smov 0  }
  0x23   :  { %s2848_s21 = smov 0   ;;  %s2850_s22 = smov 0  }
  0x24   :  { %s2852_s2 = smov 0  }
  0x25 LB: > { %3579 = sst [smem:[#allocation26_spill]] %s2681_s28  ;;  %s2886_s23 = sadd.s32 4294967295, %s2717_s2   ;;  %s2717_s2 = sphi %s2852_s2, %s46_s2   ;;  %s2713_s22 = sphi %s2850_s22, %s3674_s22   ;;  %s2709_s21 = sphi %s2848_s21, %s3673_s21   ;;  %s2705_s20 = sphi %s2846_s20, %s3672_s20   ;;  %s2701_s1 = sphi %s2844_s1, %s3671_s1   ;;  %s2697_s19 = sphi %s2842_s19, %s3670_s19   ;;  %s2693_s0 = sphi %s2840_s0, %s3669_s0   ;;  %s2689_s30 = sphi %s2838_s30, %s3668_s30   ;;  %s2685_s29 = sphi %s2836_s29, %s3676_s29   ;;  %s2681_s28 = sphi %s2834_s28, %s3675_s28   ;;  %s2677_s27 = sphi %s2832_s27, %s3666_s27  }
  0x26   : > { %3580 = sst [smem:[#allocation27_spill]] %s2689_s30  ;;  %s1962_s24 = sadd.s32 4294967294, %s2717_s2  }
  0x27   : > { %3581 = sst [smem:[#allocation28_spill]] %s2693_s0  ;;  %p3534_p0 = scmp.eq.s32.totalorder %s2717_s2, 0 }
  0x28   : > { %3582 = sst [smem:[#allocation29_spill]] %s2697_s19  ;;  %p78_p1 = scmp.ne.s32.totalorder %s2693_s0, %s2689_s30 }
  0x29   : > { %3583 = sst [smem:[#allocation30_spill]] %s2701_s1  ;;  %p3532_p2 = scmp.eq.s32.totalorder %s2886_s23, 0 }
  0x2a   : > { %3584 = sst [smem:[#allocation31_spill]] %s2705_s20  ;;  %p192_p3 = scmp.ne.s32.totalorder %s2685_s29, %s2681_s28 }
  0x2b   : > { %3585 = sst [smem:[#allocation32_spill]] %s2709_s21  ;;  %p198_p4 = scmp.ne.s32.totalorder %s2681_s28, %s2677_s27 }
  0x2c   : > { %3586 = sst [smem:[#allocation33_spill]] %s2713_s22  ;;  %p2899_p5 = por %p3532_p2, %p78_p1 }
  0x2d   : > { %p2906_p7 = por %p192_p3, %p3534_p0  ;;  %p2912_p8 = por %p198_p4, %p3532_p2 }
  0x2e   : > { %s3587_s26 = scalar_select %p2899_p5, 1, 0 }
  0x2f   : > { %s3590_s25 = scalar_select %p2912_p8, 1, 0 }
  0x30   : > { %3588 = sst [smem:[#allocation34_spill]] %s3587_s26  ;;  %p530_p9 = scmp.eq.s32.totalorder %s1962_s24, 3 }
  0x31   : > { %3591 = sst [smem:[#allocation35_spill]] %s3590_s25  ;;  %p1963_p10 = scmp.ge.s32.totalorder %s2717_s2, 1 }
  0x32   : > { %p537_p11 = scmp.lt.s32.totalorder %s2717_s2, 5  ;;  %p2918_p12 = por %p530_p9, %p78_p1 }
  0x33   : > { %s2719_s20 = smov [#allocation8]   ;;  %p3533_p4 = scmp.lt.s32.totalorder %s2717_s2, 4 }
  0x34   : > { %s3592_s27 = scalar_select %p2918_p12, 1, 0 }
  0x35   : > { %p2922_p13 = pnand %p1963_p10, %p537_p11  ;;  %s553_s17 = sshll.u32 %s2719_s20, 4  ;;  %s554_s17 = int_to_ptr.vmem [resolvable:$true] %s553_s17 }
  0x36   : > { %3593 = sst [smem:[#allocation36_spill]] %s3592_s27  ;;  %s2930_s16 = sand.u32 1, %s2717_s2  }
  0x37   : > { %s3594_s30 = scalar_select %p2922_p13, 1, 0 }
  0x38   : > { %p2145_p3 = pneg %p2922_p13  ;;  %p2942_p1 = pnand %p3533_p4, %p2906_p7 }
  0x39   : > { %s3597_s3 = sld [smem:[#allocation44_spill]] }
  0x3a   : > { %p2934_p6 = pnand %p2145_p3, %p3532_p2 }
  0x3b   : > { %s3596_s27 = scalar_select %p2942_p1, 1, 0 }
  0x3c   : > { %p2309_p10 = pneg %p2934_p6 }
  0x3f   : > { %s2307_s14 = scalar_lea.hbm %s3597_s3, 16 }
  0x40   : > { %p2308_p9 = scmp.ne.s32.totalorder %s3597_s3, %s2307_s14  ;;  %p2314_p2 = scmp.lt.u32.totalorder %s2307_s14, %s3597_s3 }
  0x42   : > { %p2310_p11 = pnand %p2309_p10, %p2308_p9 }
  0x44   : > { %p2311_p3 = pneg %p2310_p11 }
  0x46   : > { %p2316_p7 = pnand %p2314_p2, %p2311_p3 }
  0x48   : > { %2319 = shalt.err (!%p2316_p7)
}
  0x49   : > { %s2320_s4 = scalar_lea.vmem %s554_s17, 16  ;;  %s2327_s15 = scalar_lea.vmem %s554_s17, 32 }
  0x4a   : > { %p2321_p4 = scmp.ne.s32.totalorder %s554_s17, %s2320_s4  ;;  %p2328_p8 = scmp.lt.s32.totalorder %s554_s17, %s554_s17 }
  0x4b   : > { %p2329_p5 = scmp.lt.s32.totalorder %s2327_s15, %s2320_s4 }
  0x4c   : > { %p2323_p0 = pnand %p2321_p4, %p2309_p10 }
  0x4d   : > { %p2330_p13 = por %p2329_p5, %p2328_p8 }
  0x4e   : > { %p2324_p12 = pneg %p2323_p0 }
  0x50   : > { %p2331_p1 = pnand %p2330_p13, %p2324_p12 }
  0x52   : > { %2334 = shalt.err (!%p2331_p1)
}
  0x53   : > { %2148 = dma.hbm_to_vmem [thread:$0]  (!%p2934_p6), %s3597_s3, 16, %s554_s17, [#allocation7]  }
  0x54   : > { %s55_s6 = sadd.s32 1, %s2709_s21  ;;  %s2964_s14 = sand.u32 1, %s2685_s29  }
  0x55   : > { %p2966_p0 = scmp.ge.s32.totalorder %s55_s6, 2  ;;  %s2971_s24 = sshll.u32 %s2709_s21, 4 }
  0x56   : > { %s616_s20 = scalar_lea.vmem [#allocation9], %s2964_s14  ;;  %s3600_s5 = sld [smem:[#allocation46_spill]] }
  0x57   : > { %s3598_s4 = scalar_select %p2966_p0, 1, 0 }
  0x58   : > { %s623_s18 = sshll.u32 %s616_s20, 4  ;;  %s3678_s6 = smov (%p2966_p0, %s55_s6), 0  ;;  %s2984_s18 = int_to_ptr.vmem [resolvable:$true] %s623_s18 }
  0x59   : > { %3599 = sst [smem:[#allocation37_spill]] %s3678_s6  ;;  %s182_s12 = ssub.s32 %s2709_s21, %s3678_s6 }
  0x5a   : > { %p2988_p2 = scmp.eq.s32.totalorder %s182_s12, 0  ;;  %p3602_p6 = scmp.ne.s32.totalorder %s3596_s27, 0 }
  0x5c   : > { %s2982_s17 = scalar_lea.hbm %s3600_s5, %s2971_s24  ;;  %p2997_p8 = pneg %p3602_p6 }
  0x5d   : > { %s3601_s3 = scalar_select %p2988_p2, 1, 0 }
  0x5e   : > { %s2335_s1 = scalar_lea.hbm %s2982_s17, 16  ;;  %s2340_s6 = scalar_lea.hbm %s3600_s5, 32 }
  0x5f   : > { %p2336_p5 = scmp.ne.s32.totalorder %s2982_s17, %s2335_s1  ;;  %p2341_p4 = scmp.lt.u32.totalorder %s2982_s17, %s3600_s5 }
  0x60   : > { %s3603_s15 = scalar_select %p2997_p8, 1, 0 }
  0x61   : > { %p2338_p12 = pnand %p2997_p8, %p2336_p5  ;;  %p2342_p1 = scmp.lt.u32.totalorder %s2340_s6, %s2335_s1 }
  0x62   : > { %p2344_p10 = scmp.lt.u32.totalorder %s2335_s1, %s2982_s17 }
  0x63   : > { %p2339_p13 = pneg %p2338_p12  ;;  %p2343_p9 = por %p2342_p1, %p2341_p4 }
  0x65   : > { %p2345_p11 = por %p2344_p10, %p2343_p9 }
  0x67   : > { %p2346_p3 = pnand %p2345_p11, %p2339_p13 }
  0x69   : > { %2349 = shalt.err (!%p2346_p3)
}
  0x6a   : > { %s2350_s20 = scalar_lea.vmem %s2984_s18, 16  ;;  %s2720_s25 = smov [#allocation9]  }
  0x6b   : > { %p2351_p7 = scmp.ne.s32.totalorder %s2984_s18, %s2350_s20  ;;  %s2355_s10 = sshll.u32 %s2720_s25, 4  ;;  %s2356_s10 = int_to_ptr.vmem [resolvable:$false] %s2355_s10 }
  0x6c   : > { %s2357_s21 = scalar_lea.vmem %s2356_s10, 32  ;;  %p2358_p0 = scmp.lt.s32.totalorder %s2984_s18, %s2356_s10 }
  0x6d   : > { %p2353_p5 = pnand %p2351_p7, %p2997_p8  ;;  %p2359_p2 = scmp.lt.s32.totalorder %s2357_s21, %s2350_s20 }
  0x6f   : > { %p2354_p12 = pneg %p2353_p5  ;;  %p2360_p4 = por %p2359_p2, %p2358_p0 }
  0x71   : > { %p2361_p1 = pnand %p2360_p4, %p2354_p12 }
  0x73   : > { %2364 = shalt.err (!%p2361_p1)
}
  0x74   : > { %s3604_s1 = scalar_lea.sflag [#allocation10], %s2930_s16  ;;  %s3605_s6 = sadd.s32 1, %s2685_s29 }
  0x75   : > { %2158 = dma.hbm_to_vmem [thread:$0]  (!%p3602_p6), %s2982_s17, 16, %s2984_s18, %s3604_s1  }
  0x76   : > { %p3606_p13 = scmp.ne.s32.totalorder %s3601_s3, 0  ;;  %s3608_s8 = sld [smem:[#allocation49_spill]] }
  0x77   : > { %s658_s21 = scalar_lea.vmem [#allocation12], %s2964_s14  ;;  %s3549_s28 = scalar_lea.sflag [#allocation13], %s2930_s16 }
  0x78   : > { %s3027_s20 = scalar_select %p3606_p13, %s2685_s29, %s3605_s6  }
  0x79   : > { %s665_s5 = sshll.u32 %s658_s21, 4  ;;  %s666_s5 = int_to_ptr.vmem [resolvable:$true] %s665_s5 }
  0x7a   : > { %3607 = sst [smem:[#allocation38_spill]] %s3027_s20 }
  0x7c   : > { %s3033_s10 = scalar_lea.hbm %s3608_s8, %s2971_s24  ;;  %s2370_s17 = scalar_lea.hbm %s3608_s8, 32 }
  0x7d   : > { %s2365_s26 = scalar_lea.hbm %s3033_s10, 16  ;;  %p2371_p10 = scmp.lt.u32.totalorder %s3033_s10, %s3608_s8 }
  0x7e   : > { %p2366_p0 = scmp.ne.s32.totalorder %s3033_s10, %s2365_s26  ;;  %p2372_p11 = scmp.lt.u32.totalorder %s2370_s17, %s2365_s26 }
  0x7f   : > { %p2374_p7 = scmp.lt.u32.totalorder %s2365_s26, %s3033_s10 }
  0x80   : > { %p2368_p2 = pnand %p2366_p0, %p2997_p8  ;;  %p2373_p3 = por %p2372_p11, %p2371_p10 }
  0x82   : > { %p2369_p9 = pneg %p2368_p2  ;;  %p2375_p5 = por %p2374_p7, %p2373_p3 }
  0x84   : > { %p2376_p12 = pnand %p2375_p5, %p2369_p9 }
  0x86   : > { %2379 = shalt.err (!%p2376_p12)
}
  0x87   : > { %s2380_s12 = scalar_lea.vmem %s666_s5, 16  ;;  %s2721_s25 = smov [#allocation12]  }
  0x88   : > { %p2381_p4 = scmp.ne.s32.totalorder %s666_s5, %s2380_s12  ;;  %s2385_s21 = sshll.u32 %s2721_s25, 4  ;;  %s2386_s21 = int_to_ptr.vmem [resolvable:$false] %s2385_s21 }
  0x89   : > { %s2387_s3 = scalar_lea.vmem %s2386_s21, 32  ;;  %p2388_p0 = scmp.lt.s32.totalorder %s666_s5, %s2386_s21 }
  0x8a   : > { %p2383_p1 = pnand %p2381_p4, %p2997_p8  ;;  %p2389_p2 = scmp.lt.s32.totalorder %s2387_s3, %s2380_s12 }
  0x8c   : > { %p2384_p13 = pneg %p2383_p1  ;;  %p2390_p6 = por %p2389_p2, %p2388_p0 }
  0x8e   : > { %p2391_p10 = pnand %p2390_p6, %p2384_p13 }
  0x90   : > { %2394 = shalt.err (!%p2391_p10)
}
  0x91   : > { %p3609_p11 = scmp.ne.s32.totalorder %s3596_s27, 0  ;;  %s3610_s11 = sld [smem:[#allocation52_spill]] }
  0x92   : > { %s700_s1 = scalar_lea.vmem [#allocation15], %s2964_s14  ;;  %s3550_s12 = scalar_lea.sflag [#allocation16], %s2930_s16 }
  0x93   : > { %2164 = dma.hbm_to_vmem [thread:$0]  (!%p3609_p11), %s3033_s10, 16, %s666_s5, %s3549_s28  }
  0x94   : > { %s707_s6 = sshll.u32 %s700_s1, 4  ;;  %s708_s6 = int_to_ptr.vmem [resolvable:$true] %s707_s6 }
  0x97   : > { %s3060_s17 = scalar_lea.hbm %s3610_s11, %s2971_s24  ;;  %s2400_s10 = scalar_lea.hbm %s3610_s11, 32 }
  0x98   : > { %s2395_s25 = scalar_lea.hbm %s3060_s17, 16  ;;  %p2401_p7 = scmp.lt.u32.totalorder %s3060_s17, %s3610_s11 }
  0x99   : > { %p2396_p6 = scmp.ne.s32.totalorder %s3060_s17, %s2395_s25  ;;  %p2402_p5 = scmp.lt.u32.totalorder %s2400_s10, %s2395_s25 }
  0x9a   : > { %p2404_p4 = scmp.lt.u32.totalorder %s2395_s25, %s3060_s17 }
  0x9b   : > { %p2398_p9 = pnand %p2396_p6, %p2997_p8  ;;  %p2403_p12 = por %p2402_p5, %p2401_p7 }
  0x9d   : > { %p2399_p3 = pneg %p2398_p9  ;;  %p2405_p1 = por %p2404_p4, %p2403_p12 }
  0x9f   : > { %p2406_p13 = pnand %p2405_p1, %p2399_p3 }
  0xa1   : > { %2409 = shalt.err (!%p2406_p13)
}
  0xa2   : > { %s2410_s18 = scalar_lea.vmem %s708_s6, 16  ;;  %s2722_s1 = smov [#allocation15]  }
  0xa3   : > { %p2411_p0 = scmp.ne.s32.totalorder %s708_s6, %s2410_s18  ;;  %s2415_s28 = sshll.u32 %s2722_s1, 4  ;;  %s2416_s28 = int_to_ptr.vmem [resolvable:$false] %s2415_s28 }
  0xa4   : > { %s2417_s21 = scalar_lea.vmem %s2416_s28, 32  ;;  %p2418_p6 = scmp.lt.s32.totalorder %s708_s6, %s2416_s28 }
  0xa5   : > { %p2413_p2 = pnand %p2411_p0, %p2997_p8  ;;  %p2419_p9 = scmp.lt.s32.totalorder %s2417_s21, %s2410_s18 }
  0xa7   : > { %p2414_p10 = pneg %p2413_p2  ;;  %p2420_p11 = por %p2419_p9, %p2418_p6 }
  0xa9   : > { %p2421_p5 = pnand %p2420_p11, %p2414_p10 }
  0xab   : > { %2424 = shalt.err (!%p2421_p5)
}
  0xac   : > { %p3611_p7 = scmp.ne.s32.totalorder %s3596_s27, 0  ;;  %s58_s28 = sadd.s32 1, %s2713_s22 }
  0xad   : > { %s65_s25 = sadd.s32 1, %s2697_s19  ;;  %p3612_p11 = scmp.ne.s32.totalorder %s3598_s4, 0 }
  0xae   : > { %2170 = dma.hbm_to_vmem [thread:$0]  (!%p3611_p7), %s3060_s17, 16, %s708_s6, %s3550_s12  }
  0xaf   : > { %s3680_s28 = smov (!%p3612_p11, %s58_s28), %s2713_s22  ;;  %p72_p3 = scmp.ne.s32.totalorder %s2697_s19, %s2693_s0 }
  0xb0   : > { %s3091_s5 = sand.u32 1, %s2697_s19   ;;  %p60_p12 = scmp.ge.s32.totalorder %s3680_s28, 2 }
  0xb1   : > { %p3613_p4 = scmp.eq.s32.totalorder %s2717_s2, 0  ;;  %p3614_p13 = scmp.eq.s32.totalorder %s2886_s23, 3 }
  0xb2   : > { %s3682_s28 = smov (%p60_p12, %s3680_s28), 0  ;;  %s1966_s17 = sshll.u32 %s3091_s5, 2 }
  0xb3   : > { %p74_p1 = por %p3613_p4, %p72_p3  ;;  %p3097_p0 = por %p3614_p13, %p72_p3 }
  0xb4   : > { %3616 = sst [smem:[#allocation39_spill]] %s3682_s28  ;;  %s1967_s4 = sshll.u32 %s2713_s22, 6 }
  0xb5   : > { %s3615_s10 = scalar_select %p3097_p0, 1, 0 }
  0xb6   : > { %s62_s6 = ssub.s32 %s2713_s22, %s3682_s28  ;;  %s3617_s18 = sld [smem:[#allocation41_spill]] }
  0xb7   : > { %p63_p2 = scmp.eq.s32.totalorder %s62_s6, 0  ;;  %s574_s21 = scalar_lea.vmem [#allocation3], %s1966_s17 }
  0xb8   : > { %s581_s12 = sshll.u32 %s574_s21, 4  ;;  %p3618_p10 = scmp.lt.s32.totalorder %s2717_s2, 4  ;;  %s3121_s12 = int_to_ptr.vmem [resolvable:$true] %s581_s12 }
  0xb9   : > { %s3119_s11 = scalar_select %p63_p2, %s2697_s19, %s65_s25  }
  0xba   : > { %p3114_p6 = pnand %p3618_p10, %p74_p1  ;;  %s571_s6 = scalar_lea.sflag [#allocation4], %s3091_s5 }
  0xbb   : > { %3620 = sst [smem:[#allocation40_spill]] %s3119_s11 }
  0xbc   : > { %s3110_s1 = scalar_lea.hbm %s3617_s18, %s1967_s4  ;;  %p2427_p5 = pneg %p3114_p6 }
  0xbd   : > { %s2425_s4 = scalar_lea.hbm %s3110_s1, 64  ;;  %s2430_s26 = scalar_lea.hbm %s3617_s18, 128 }
  0xbe   : > { %p2426_p9 = scmp.ne.s32.totalorder %s3110_s1, %s2425_s4  ;;  %p2431_p12 = scmp.lt.u32.totalorder %s3110_s1, %s3617_s18 }
  0xbf   : > { %p2432_p4 = scmp.lt.u32.totalorder %s2430_s26, %s2425_s4  ;;  %p2434_p13 = scmp.lt.u32.totalorder %s2425_s4, %s3110_s1 }
  0xc0   : > { %p2428_p11 = pnand %p2427_p5, %p2426_p9 }
  0xc1   : > { %p2433_p1 = por %p2432_p4, %p2431_p12 }
  0xc2   : > { %p2429_p3 = pneg %p2428_p11 }
  0xc3   : > { %p2435_p2 = por %p2434_p13, %p2433_p1 }
  0xc5   : > { %p2436_p10 = pnand %p2435_p2, %p2429_p3 }
  0xc7   : > { %2439 = shalt.err (!%p2436_p10)
}
  0xc8   : > { %s2440_s25 = scalar_lea.vmem %s3121_s12, 64  ;;  %s2723_s17 = smov [#allocation3]  }
  0xc9   : > { %p2441_p9 = scmp.ne.s32.totalorder %s3121_s12, %s2440_s25  ;;  %s2445_s3 = sshll.u32 %s2723_s17, 4  ;;  %s2446_s3 = int_to_ptr.vmem [resolvable:$false] %s2445_s3 }
  0xca   : > { %s2447_s28 = scalar_lea.vmem %s2446_s3, 128  ;;  %p2448_p7 = scmp.lt.s32.totalorder %s3121_s12, %s2446_s3 }
  0xcb   : > { %p2443_p11 = pnand %p2441_p9, %p2427_p5  ;;  %p2449_p12 = scmp.lt.s32.totalorder %s2447_s28, %s2440_s25 }
  0xcd   : > { %p2444_p0 = pneg %p2443_p11  ;;  %p2450_p4 = por %p2449_p12, %p2448_p7 }
  0xcf   : > { %p2451_p1 = pnand %p2450_p4, %p2444_p0 }
  0xd1   : > { %2454 = shalt.err (!%p2451_p1)
}
  0xd2   : > { %2152 = dma.hbm_to_vmem [thread:$0]  (!%p3114_p6), %s3110_s1, 64, %s3121_s12, %s571_s6  }
  0xd3   : > { %s1968_s4 = sshll.u32 %s2713_s22, 4  ;;  %s591_s26 = scalar_lea.vmem [#allocation6], %s3091_s5 }
  0xd4   : > { %s598_s21 = sshll.u32 %s591_s26, 4  ;;  %s3621_s11 = sld [smem:[#allocation42_spill]]  ;;  %s599_s21 = int_to_ptr.vmem [resolvable:$true] %s598_s21 }
  0xd5   : > { %s589_s25 = scalar_lea.sflag [#allocation7], %s2930_s16 }
  0xda   : > { %s3154_s3 = scalar_lea.hbm %s3621_s11, %s1968_s4  ;;  %s2460_s1 = scalar_lea.hbm %s3621_s11, 32 }
  0xdb   : > { %s2455_s28 = scalar_lea.hbm %s3154_s3, 16  ;;  %p2461_p13 = scmp.lt.u32.totalorder %s3154_s3, %s3621_s11 }
  0xdc   : > { %p2456_p7 = scmp.ne.s32.totalorder %s3154_s3, %s2455_s28  ;;  %p2462_p2 = scmp.lt.u32.totalorder %s2460_s1, %s2455_s28 }
  0xdd   : > { %p2464_p9 = scmp.lt.u32.totalorder %s2455_s28, %s3154_s3 }
  0xde   : > { %p2458_p0 = pnand %p2456_p7, %p2427_p5  ;;  %p2463_p10 = por %p2462_p2, %p2461_p13 }
  0xe0   : > { %p2459_p3 = pneg %p2458_p0  ;;  %p2465_p11 = por %p2464_p9, %p2463_p10 }
  0xe2   : > { %p2466_p12 = pnand %p2465_p11, %p2459_p3 }
  0xe4   : > { %2469 = shalt.err (!%p2466_p12)
}
  0xe5   : > { %s2470_s4 = scalar_lea.vmem %s599_s21, 16  ;;  %s2724_s26 = smov [#allocation6]  }
  0xe6   : > { %p2471_p4 = scmp.ne.s32.totalorder %s599_s21, %s2470_s4  ;;  %s2475_s17 = sshll.u32 %s2724_s26, 4  ;;  %s2476_s17 = int_to_ptr.vmem [resolvable:$false] %s2475_s17 }
  0xe7   : > { %s2477_s12 = scalar_lea.vmem %s2476_s17, 32  ;;  %p2478_p0 = scmp.lt.s32.totalorder %s599_s21, %s2476_s17 }
  0xe8   : > { %p2473_p1 = pnand %p2471_p4, %p2427_p5  ;;  %p2479_p8 = scmp.lt.s32.totalorder %s2477_s12, %s2470_s4 }
  0xea   : > { %p2474_p7 = pneg %p2473_p1  ;;  %p2480_p2 = por %p2479_p8, %p2478_p0 }
  0xec   : > { %p2481_p13 = pnand %p2480_p2, %p2474_p7 }
  0xee   : > { %2484 = shalt.err (!%p2481_p13)
}
  0xef   : > { %2155 = dma.hbm_to_vmem [thread:$0]  (!%p3114_p6), %s3154_s3, 16, %s599_s21, %s589_s25  }
  0xf0   : > { %s3622_s7 = sld [smem:[#allocation48_spill]]  ;;  %s641_s6 = scalar_lea.vmem [#allocation11], %s2964_s14 }
  0xf1   : > { %s648_s18 = sshll.u32 %s641_s6, 4  ;;  %s3623_s9 = sld [smem:[#allocation50_spill]]  ;;  %s649_s18 = int_to_ptr.vmem [resolvable:$true] %s648_s18 }
  0xf2   : > { %p3624_p6 = scmp.ne.s32.totalorder %s3603_s15, 0 }
  0xf6   : > { %s3180_s1 = scalar_lea.hbm %s3622_s7, %s2971_s24  ;;  %s2490_s25 = scalar_lea.hbm %s3622_s7, 32 }
  0xf7   : > { %s3187_s26 = scalar_lea.hbm %s3623_s9, %s2971_s24  ;;  %s2485_s17 = scalar_lea.hbm %s3180_s1, 16 }
  0xf8   : > { %p2486_p8 = scmp.ne.s32.totalorder %s3180_s1, %s2485_s17  ;;  %p2491_p10 = scmp.lt.u32.totalorder %s3180_s1, %s3622_s7 }
  0xf9   : > { %p2492_p9 = scmp.lt.u32.totalorder %s2490_s25, %s2485_s17  ;;  %p2494_p12 = scmp.lt.u32.totalorder %s2485_s17, %s3180_s1 }
  0xfa   : > { %p2488_p5 = pnand %p2486_p8, %p3624_p6 }
  0xfb   : > { %p2493_p11 = por %p2492_p9, %p2491_p10 }
  0xfc   : > { %p2489_p3 = pneg %p2488_p5 }
  0xfd   : > { %p2495_p4 = por %p2494_p12, %p2493_p11 }
  0xff   : > { %p2496_p1 = pnand %p2495_p4, %p2489_p3 }
 0x101   : > { %2499 = shalt.err (!%p2496_p1)
}
 0x102   : > { %s2500_s5 = scalar_lea.vmem %s649_s18, 16  ;;  %s2725_s6 = smov [#allocation11]  }
 0x103   : > { %p2501_p7 = scmp.ne.s32.totalorder %s649_s18, %s2500_s5  ;;  %s2505_s4 = sshll.u32 %s2725_s6, 4  ;;  %s2506_s4 = int_to_ptr.vmem [resolvable:$false] %s2505_s4 }
 0x104   : > { %s2507_s8 = scalar_lea.vmem %s2506_s4, 32  ;;  %p2508_p13 = scmp.lt.s32.totalorder %s649_s18, %s2506_s4 }
 0x105   : > { %p2503_p0 = pnand %p2501_p7, %p3624_p6  ;;  %p2509_p8 = scmp.lt.s32.totalorder %s2507_s8, %s2500_s5 }
 0x107   : > { %p2504_p2 = pneg %p2503_p0  ;;  %p2510_p5 = por %p2509_p8, %p2508_p13 }
 0x109   : > { %p2511_p9 = pnand %p2510_p5, %p2504_p2 }
 0x10b   : > { %2514 = shalt.err (!%p2511_p9)
}
 0x10c   : > { %p3625_p10 = scmp.ne.s32.totalorder %s3596_s27, 0  ;;  %s3626_s17 = scalar_lea.sflag [#allocation10], %s2930_s16 }
 0x10d   : > { %s675_s21 = scalar_lea.vmem [#allocation14], %s2964_s14  ;;  %s3627_s13 = sld [smem:[#allocation54_spill]] }
 0x10e   : > { %2161 = dma.hbm_to_vmem [thread:$0]  (!%p3625_p10), %s3180_s1, 16, %s649_s18, %s3626_s17  }
 0x10f   : > { %s682_s3 = sshll.u32 %s675_s21, 4  ;;  %s2515_s5 = scalar_lea.hbm %s3187_s26, 16  ;;  %s683_s3 = int_to_ptr.vmem [resolvable:$true] %s682_s3 }
 0x110   : > { %p2516_p3 = scmp.ne.s32.totalorder %s3187_s26, %s2515_s5  ;;  %s2520_s8 = scalar_lea.hbm %s3623_s9, 32 }
 0x111   : > { %p2521_p4 = scmp.lt.u32.totalorder %s3187_s26, %s3623_s9  ;;  %p2522_p1 = scmp.lt.u32.totalorder %s2520_s8, %s2515_s5 }
 0x112   : > { %p2518_p11 = pnand %p2516_p3, %p3624_p6  ;;  %p2524_p0 = scmp.lt.u32.totalorder %s2515_s5, %s3187_s26 }
 0x113   : > { %s3213_s28 = scalar_lea.hbm %s3627_s13, %s2971_s24  ;;  %p2523_p7 = por %p2522_p1, %p2521_p4 }
 0x114   : > { %p2519_p12 = pneg %p2518_p11 }
 0x115   : > { %p2525_p2 = por %p2524_p0, %p2523_p7 }
 0x117   : > { %p2526_p13 = pnand %p2525_p2, %p2519_p12 }
 0x119   : > { %2529 = shalt.err (!%p2526_p13)
}
 0x11a   : > { %s2530_s24 = scalar_lea.vmem %s683_s3, 16  ;;  %s2726_s1 = smov [#allocation14]  }
 0x11b   : > { %p2531_p8 = scmp.ne.s32.totalorder %s683_s3, %s2530_s24  ;;  %s2535_s18 = sshll.u32 %s2726_s1, 4  ;;  %s2536_s18 = int_to_ptr.vmem [resolvable:$false] %s2535_s18 }
 0x11c   : > { %s2537_s17 = scalar_lea.vmem %s2536_s18, 32  ;;  %p2538_p3 = scmp.lt.s32.totalorder %s683_s3, %s2536_s18 }
 0x11d   : > { %p2533_p5 = pnand %p2531_p8, %p3624_p6  ;;  %p2539_p11 = scmp.lt.s32.totalorder %s2537_s17, %s2530_s24 }
 0x11f   : > { %p2534_p9 = pneg %p2533_p5  ;;  %p2540_p10 = por %p2539_p11, %p2538_p3 }
 0x121   : > { %p2541_p1 = pnand %p2540_p10, %p2534_p9 }
 0x123   : > { %2544 = shalt.err (!%p2541_p1)
}
 0x124   : > { %p3628_p4 = scmp.ne.s32.totalorder %s3596_s27, 0  ;;  %s3629_s7 = scalar_lea.sflag [#allocation13], %s2930_s16 }
 0x125   : > { %s725_s11 = scalar_lea.vmem [#allocation17], %s2964_s14  ;;  %s2545_s25 = scalar_lea.hbm %s3213_s28, 16 }
 0x126   : > { %2167 = dma.hbm_to_vmem [thread:$0]  (!%p3628_p4), %s3187_s26, 16, %s683_s3, %s3629_s7  }
 0x127   : > { %s732_s21 = sshll.u32 %s725_s11, 4  ;;  %p2546_p12 = scmp.ne.s32.totalorder %s3213_s28, %s2545_s25  ;;  %s733_s21 = int_to_ptr.vmem [resolvable:$true] %s732_s21 }
 0x128   : > { %s2550_s6 = scalar_lea.hbm %s3627_s13, 32  ;;  %p2551_p0 = scmp.lt.u32.totalorder %s3213_s28, %s3627_s13 }
 0x129   : > { %p2548_p10 = pnand %p2546_p12, %p3624_p6  ;;  %p2552_p2 = scmp.lt.u32.totalorder %s2550_s6, %s2545_s25 }
 0x12a   : > { %p2554_p8 = scmp.lt.u32.totalorder %s2545_s25, %s3213_s28 }
 0x12b   : > { %p2549_p7 = pneg %p2548_p10  ;;  %p2553_p13 = por %p2552_p2, %p2551_p0 }
 0x12d   : > { %p2555_p5 = por %p2554_p8, %p2553_p13 }
 0x12f   : > { %p2556_p9 = pnand %p2555_p5, %p2549_p7 }
 0x131   : > { %2559 = shalt.err (!%p2556_p9)
}
 0x132   : > { %s2560_s14 = scalar_lea.vmem %s733_s21, 16  ;;  %s2727_s26 = smov [#allocation17]  }
 0x133   : > { %p2561_p3 = scmp.ne.s32.totalorder %s733_s21, %s2560_s14  ;;  %s2565_s3 = sshll.u32 %s2727_s26, 4  ;;  %s2566_s3 = int_to_ptr.vmem [resolvable:$false] %s2565_s3 }
 0x134   : > { %s2567_s24 = scalar_lea.vmem %s2566_s3, 32  ;;  %p2568_p12 = scmp.lt.s32.totalorder %s733_s21, %s2566_s3 }
 0x135   : > { %p2563_p11 = pnand %p2561_p3, %p3624_p6  ;;  %p2569_p10 = scmp.lt.s32.totalorder %s2567_s24, %s2560_s14 }
 0x137   : > { %p2564_p1 = pneg %p2563_p11  ;;  %p2570_p4 = por %p2569_p10, %p2568_p12 }
 0x139   : > { %p2571_p0 = pnand %p2570_p4, %p2564_p1 }
 0x13b   : > { %2574 = shalt.err (!%p2571_p0)
}
 0x13c   : > { %p3630_p2 = scmp.ne.s32.totalorder %s3596_s27, 0  ;;  %s3631_s1 = scalar_lea.sflag [#allocation16], %s2930_s16 }
 0x13d   : > { %p3632_p7 = scmp.ne.s32.totalorder %s3594_s30, 0 }
 0x13e   : > { %2173 = dma.hbm_to_vmem [thread:$0]  (!%p3630_p2), %s3213_s28, 16, %s733_s21, %s3631_s1  }
 0x13f   : > { %753 = sbr.rel (%p3632_p7) target bundleno = 3540 (0xdd4), region = 92  ;;  %s3633_s15 = sld [smem:[#allocation34_spill]] (!%p3632_p7) }
 0x140   : > { %s3257_s18 = sand.u32 (!%p3632_p7), 1, %s2693_s0  }
 0x141   : > { %s1976_s17 = sshll.u32 (!%p3632_p7), %s3257_s18, 2  ;;  %s756_s7 = scalar_lea.sflag (!%p3632_p7), [#allocation4], %s3257_s18 }
 0x142   : > { %s3261_s11 = scalar_lea.vmem (!%p3632_p7), [#allocation3], %s1976_s17 }
 0x145   : > { %p3634_p6 = scmp.ne.s32.totalorder (!%p3632_p7), %s3633_s15, 0 }
 0x147   : > { %2648 = dma.done.wait (%p3634_p6), %s756_s7, 64  }
 0x148   : > { %2650 = vsyncadd (%p3634_p6), %s756_s7, 4294967232  ;;  %s764_s16 = sand.u32 1, %s2886_s23  }
 0x149   : > { %s765_s30 = scalar_lea.sflag [#allocation7], %s764_s16 }
 0x14a   : > { %2652 = dma.done.wait (%p3634_p6), %s765_s30, 16  }
 0x14b   : > { %2654 = vsyncadd (%p3634_p6), %s765_s30, 4294967280  ;;  %p3635_p4 = scmp.eq.s32.totalorder %s2886_s23, 0 }
 0x14d   : > { %2656 = dma.done.wait (%p3635_p4), [#allocation7], 16   ;;  %p3636_p13 = pmov %p3635_p4 }
 0x14e   : > { %s3637_s28 = sld [smem:[#allocation26_spill]]  ;;  %s3638_s21 = sld [smem:[#allocation35_spill]] }
 0x14f   : > { %2658 = vsyncadd (%p3636_p13), [#allocation7], 4294967280  ;;  %s777_s12 = scalar_lea.sflag [#allocation10], %s764_s16 }
 0x154   : > { %s3278_s25 = sand.u32 1, %s3637_s28   ;;  %p3639_p8 = scmp.ne.s32.totalorder %s3638_s21, 0 }
 0x156   : > { %2660 = dma.done.wait (%p3639_p8), %s777_s12, 32  }
 0x157   : > { %2662 = vsyncadd (%p3639_p8), %s777_s12, 4294967264  ;;  %s793_s4 = scalar_lea.sflag [#allocation13], %s764_s16 }
 0x158   : > { %2664 = dma.done.wait (%p3639_p8), %s793_s4, 32  }
 0x159   : > { %2666 = vsyncadd (%p3639_p8), %s793_s4, 4294967264  ;;  %s809_s14 = scalar_lea.sflag [#allocation16], %s764_s16 }
 0x15a   : > { %2668 = dma.done.wait (%p3639_p8), %s809_s14, 32  }
 0x15b   : > { %2670 = vsyncadd (%p3639_p8), %s809_s14, 4294967264  ;;  %s3640_s3 = sld [smem:[#allocation30_spill]]  ;;  %s1978_s24 = sshll.u32 %s3257_s18, 3 }
 0x15c   : > { %s3641_s30 = sld [smem:[#allocation45_spill]]  ;;  %s3642_s4 = sld [smem:[#allocation47_spill]] }
 0x15d   : > { %s3643_s8 = sld [smem:[#allocation51_spill]]  ;;  %s3644_s9 = sld [smem:[#allocation53_spill]] }
 0x15e   : > { %s3645_s7 = sld [smem:[#allocation55_spill]]  ;;  %s3646_s20 = sld [smem:[#allocation56_spill]] }
 0x15f   : > { %s819_s12 = scalar_lea.vmem [#allocation17], %s3278_s25 }
 0x161   : > { %p926_p5 = scmp.lt.s32.totalorder %s3640_s3, 1  ;;  %p1987_p9 = scmp.ne.s32.totalorder %s3640_s3, 0 }
 0x162   : > { %v957_v0 = vld [vmem:[%s3261_s11] sm:$0xf] (!%p1987_p9)  ;;  %vm961_vm0 = vcmask (!%p1987_p9), 261120   ;;  %s3647_s19 = sld [smem:[#allocation43_spill]] (!%p1987_p9)  ;;  %v1989_v14 = vld [vmem:[#allocation8] ss:$0 sm:$0xff] (!%p1987_p9) }
 0x163   : > { %s3300_s1 = scalar_select %p926_p5, %s3640_s3, 1 }
 0x164   : > { %956 = sbr.rel (%p1987_p9) target bundleno = 672 (0x2a0), region = 132  ;;  %v958_v1 = vunpack.c.l.bf16 (!%p1987_p9), %v957_v0 }
 0x165   : > { %s2026_s15 = sshll.u32 %s3300_s1, 4  ;;  %s2029_s17 = sshll.u32 %s3300_s1, 5 }
 0x166   : > { %s3307_s28 = scalar_lea.vmem %s3641_s30, %s2026_s15  ;;  %s3312_s14 = scalar_lea.vmem %s3642_s4, %s2026_s15  ;;  %v962_v2 = vsel (!%p1987_p9), %vm961_vm0, %v958_v1, 0.0 }
 0x167   : > { %s3317_s6 = scalar_lea.vmem %s3643_s8, %s2026_s15  ;;  %s3322_s13 = scalar_lea.vmem %s3644_s9, %s2029_s17  ;;  %963 = vadd.xlane.f32.xlu0 (!%p1987_p9), %v962_v2 }
 0x168   : > { %s948_s16 = scalar_lea.vmem %s3645_s7, %s3300_s1  ;;  %s951_s21 = scalar_lea.vmem %s3646_s20, %s3300_s1  ;;  %v1988_v12 = vld [vmem:[%s3647_s19] ss:$0 sm:$0xff] (!%p1987_p9) }
 0x169   : > { %s3333_s4 = scalar_lea.vmem [#allocation18], %s1978_s24 }
 0x1f4   : > { %v964_v3 = vpop.xlane.xlu0 %963 }
 0x1f5   : > { %v966_v4 = vmul.f32 0.03125, %v964_v3 }
 0x1f7   : > { %v967_v5 = vsub.f32 %v958_v1, %v966_v4 }
 0x1f9   : > { %v968_v6 = vmul.f32 %v967_v5, %v967_v5 }
 0x1fb   : > { %v969_v7 = vsel %vm961_vm0, %v968_v6, 0.0 }
 0x1fc   : > { %970 = vadd.xlane.f32.xlu0 %v969_v7 }
 0x289   : > { %v971_v8 = vpop.xlane.xlu0 %970 }
 0x28a   : > { %v972_v9 = vmul.f32 0.03125, %v971_v8 }
 0x28c   : > { %v973_v10 = vadd.f32 1e-12, %v972_v9 }
 0x28e   : > { %2279 = vrsqrt.f32 %v973_v10 }
 0x298   : > { %v2280_v11 = vpop.eup %2279 }
 0x299   : > { %v975_v13 = vmul.f32 %v2280_v11, %v967_v5 }
 0x29b   : > { %v982_v15 = vmul.f32 %v1988_v12, %v975_v13 }
 0x29d   : > { %v989_v16 = vadd.f32 %v1989_v14, %v982_v15 }
 0x29f   : > { %990 = vst.msk [vmem:[#allocation2] sm:$0xff] %vm961_vm0, %v989_v16 }
 0x2a0 PF: > { %v2281_v17 = vld [vmem:[%s3307_s28] sm:$0xff]   ;;  %v2728_v18 = vmov 0.0   ;;  %v2282_v19 = vld [vmem:[%s3307_s28 + $0x8] sm:$0xff]   ;;  %vm2729_vm1 = vmmov 0   ;;  %vm1017_vm2 = vcmask 261120   ;;  %s3648_s22 = scalar_lea.vmem [#allocation9], %s3278_s25 }
 0x2a1   : > { %2055 = vmatprep.subr.bf16.mxu0 %v2728_v18  ;;  %2063 = vmatprep.subr.bf16.mxu1 %v2728_v18  ;;  %v1990_v22 = vld [vmem:[%s3648_s22] ss:$0 sm:$0xff]  ;;  %s2730_s20 = smov 112   ;;  %s2731_s11 = smov 96   ;;  %vm1076_vm3 = vcmask 130048   ;;  %vm1172_vm4 = vcmask 64512  }
 0x2a2   : > { %2056 = vmatpush3.bf16.msra.mxu0 %v2281_v17  ;;  %2059 = vmatprep.mubr.msk.bf16.mxu0 %vm2729_vm1, %v2728_v18  ;;  %s3649_s27 = scalar_lea.vmem [#allocation6], %s3257_s18  ;;  %s2732_s5 = smov 64   ;;  %vm1202_vm5 = vcmask 1043456   ;;  %v2283_v6 = vld [vmem:[%s3312_s14] sm:$0xff]   ;;  %v2284_v7 = vld [vmem:[%s3312_s14 + $0x8] sm:$0xff]   ;;  %vm1513_vm6 = vcmask 523264  }
 0x2a3   : > { %2057 = vmatprep.subr.bf16.mxu0 %v2728_v18  ;;  %2065 = vmatprep.mubr.msk.bf16.mxu1 %vm2729_vm1, %v2728_v18  ;;  %v1994_v35 = vld [vmem:[%s3649_s27] ss:$0 sm:$0xff]  ;;  %s2733_s8 = smov 16   ;;  %s3650_s23 = scalar_lea.vmem [#allocation11], %s3278_s25 }
 0x2a4   : > { %s3651_s26 = scalar_lea.vmem [#allocation12], %s3278_s25  ;;  %s3652_s3 = scalar_lea.vmem [#allocation14], %s3278_s25 }
 0x2a5   : > { %s3656_s14 = sld [smem:[#allocation30_spill]] }
 0x2a6   : > { %v3349_v20 = vld [vmem:[#allocation2] sm:$0xff]  ;;  %2058 = vmatpush3.bf16.msra.mxu0 %v2282_v19 }
 0x2a7   : > { %v993_v21 = vpack.c.bf16 %v3349_v20, %v3349_v20  ;;  %2069 = vmatprep.subr.bf16.mxu0 %v2728_v18 }
 0x2a9   : > { %2060 = vmatmul.mubr.msk.bf16.vlgmr.msra.gmra.mrb[0].mxu0 %vm1017_vm2, %v993_v21  ;;  %v1999_v21 = vld [vmem:[%s3650_s23] ss:$0 sm:$0xff] }
 0x2aa   : > { %2071 = vmatprep.mubr.msk.bf16.mxu0 %vm2729_vm1, %v2728_v18 }
 0x2ab   : > { %p2017_p3 = scmp.ne.s32.totalorder %s3656_s14, 1 }
 0x2ac   : > { %vm2735_vm7 = vmmov (!%p2017_p3), 0   ;;  %s3658_s0 = sld [smem:[#allocation58_spill]] (!%p2017_p3) }
 0x37c   : > { %v1055_v23 = vpop.f32.mrb[0].mxu0 }
 0x37d   : > { %v1056_v24 = vadd.f32 %v1990_v22, %v1055_v23  ;;  %v2061_v25 = vpop.f32.mrb[1].mxu0 }
 0x37e   : > { %v1058_v26 = vpop.f32.mrb[2].mxu0 }
 0x37f   : > { %v1065_v27 = vpack.c.bf16 %v1056_v24, %v1056_v24  ;;  %1062 = vrot.lane.b32.xlu0 %v1056_v24, %s2730_s20  ;;  %v2062_v28 = vpop.f32.mrb[3].mxu0 }
 0x381   : > { %1074 = vrot.lane.b32.xlu1 %v1065_v27, %s2731_s11 }
 0x3f1   : > { %v1063_v29 = vpop.permute.xlu0 %1062 }
 0x3f2   : > { %v1066_v30 = vpack.c.bf16 %v1063_v29, %v1063_v29 }
 0x3f3   : > { %v1075_v31 = vpop.permute.xlu1 %1074 }
 0x3f4   : > { %1124 = vrot.lane.b32.xlu0 %v1066_v30, %s2731_s11  ;;  %v1081_v32 = vsel %vm1076_vm3, %v1075_v31, 0 }
 0x3f5   : > { %2064 = vmatpush3.bf16.xpose.msra.mxu1 %v1081_v32 }
 0x3f6   : > { %2075 = vmatprep.subr.bf16.mxu1 %v2728_v18 }
 0x3fc   : > { %2066 = vmatmul.mubr.msk.bf16.vlgmr.msra.gmra.mrb[0].mxu1 %vm1076_vm3, %v1065_v27 }
 0x3fd   : > { %2077 = vmatprep.mubr.msk.bf16.mxu1 %vm2729_vm1, %v2728_v18 }
 0x466   : > { %v1125_v33 = vpop.permute.xlu0 %1124 }
 0x467   : > { %v1130_v34 = vsel %vm1076_vm3, %v1125_v33, 0 }
 0x468   : > { %2070 = vmatpush3.bf16.xpose.msra.mxu0 %v1130_v34  ;;  %v2285_v34 = vld [vmem:[%s3317_s6] sm:$0xff]  }
 0x469   : > { %2081 = vmatprep.subr.bf16.mxu0 %v2728_v18 }
 0x46f   : > { %2072 = vmatmul.mubr.msk.bf16.vlgmr.msra.gmra.mrb[4].mxu0 %vm1076_vm3, %v1066_v30 }
 0x470   : > { %2083 = vmatprep.mubr.msk.bf16.mxu0 %vm2729_vm1, %v2728_v18 }
 0x4cf   : > { %v1117_v36 = vpop.f32.mrb[0].mxu1 }
 0x4d0   : > { %v1118_v37 = vadd.f32 %v1994_v35, %v1117_v36  ;;  %v2067_v38 = vpop.f32.mrb[1].mxu1 }
 0x4d1   : > { %v1120_v39 = vpop.f32.mrb[2].mxu1 }
 0x4d2   : > { %v2068_v40 = vpop.f32.mrb[3].mxu1  ;;  %v1173_v41 = vsel %vm1172_vm4, %v1118_v37, -inf  ;;  %v2003_v39 = vld [vmem:[%s3651_s26] ss:$0 sm:$0xff] }
 0x4d3   : > { %1174 = vmax.xlane.f32.xlu0 %v1173_v41  ;;  %v2004_v41 = vld [vmem:[%s3652_s3] ss:$0 sm:$0xff] }
 0x542   : > { %v1166_v42 = vpop.f32.mrb[4].mxu0 }
 0x543   : > { %v1167_v43 = vadd.f32 %v1994_v35, %v1166_v42  ;;  %v2073_v44 = vpop.f32.mrb[5].mxu0  ;;  %v2286_v35 = vld [vmem:[%s3317_s6 + $0x8] sm:$0xff]   ;;  %s3653_s6 = scalar_lea.vmem [#allocation15], %s3278_s25 }
 0x544   : > { %v1169_v45 = vpop.f32.mrb[6].mxu0 }
 0x545   : > { %v2074_v46 = vpop.f32.mrb[7].mxu0  ;;  %v1176_v47 = vsel %vm1172_vm4, %v1167_v43, -inf  ;;  %v2287_v45 = vld [vmem:[%s3322_s13] sm:$0xff]  }
 0x546   : > { %1177 = vmax.xlane.f32.xlu1 %v1176_v47  ;;  %v2288_v46 = vld [vmem:[%s3322_s13 + $0x8] sm:$0xff]   ;;  %v2289_v47 = vld [vmem:[%s3322_s13 + $0x10] sm:$0xff]  }
 0x557   : > { %1246 = vrot.lane.b32.xlu1 %v1066_v30, %s2732_s5 }
 0x560   : > { %v1175_v48 = vpop.xlane.xlu0 %1174 }
 0x561   : > { %v1179_v49 = vsub.f32 %v1118_v37, %v1175_v48  ;;  %v2290_v48 = vld [vmem:[%s3322_s13 + $0x18] sm:$0xff]  }
 0x563   : > { %v1181_v52 = vmul.f32 1.442695, %v1179_v49  ;;  %v2005_v49 = vld [vmem:[%s3653_s6] ss:$0 sm:$0xff] }
 0x5d3   : > { %v1178_v50 = vpop.xlane.xlu1 %1177 }
 0x5d4   : > { %v1180_v51 = vsub.f32 %v1167_v43, %v1178_v50 }
 0x5d6   : > { %v1183_v53 = vmul.f32 1.442695, %v1180_v51 }
 0x5d7   : > { %v1247_v54 = vpop.permute.xlu1 %1246 }
 0x5d8   : > { %2291 = vpow2.f32 %v1183_v53  ;;  %v1252_v55 = vsel %vm1202_vm5, %v1247_v54, 0 }
 0x5d9   : > { %2082 = vmatpush3.bf16.msra.mxu0 %v1252_v55  ;;  %2293 = vpow2.f32 %v1181_v52 }
 0x5da   : > { %2095 = vmatprep.subr.bf16.mxu0 %v2728_v18 }
 0x5e2   : > { %v2292_v56 = vpop.eup %2291 }
 0x5e3   : > { %v1188_v57 = vsel %vm1172_vm4, %v2292_v56, 0.0  ;;  %v2294_v58 = vpop.eup %2293 }
 0x5e4   : > { %1189 = vadd.xlane.f32.xlu0 %v1188_v57  ;;  %v1185_v59 = vsel %vm1172_vm4, %v2294_v58, 0.0 }
 0x5e8   : > { %1186 = vadd.xlane.f32.xlu0 %v1185_v59 }
 0x5fe   : > { %1197 = vrot.lane.b32.xlu0 %v1065_v27, %s2732_s5 }
 0x671   : > { %v1190_v60 = vpop.xlane.xlu0 %1189 }
 0x672   : > { %2295 = vrcp.f32 %v1190_v60 }
 0x675   : > { %v1187_v61 = vpop.xlane.xlu0 %1186 }
 0x676   : > { %2297 = vrcp.f32 %v1187_v61 }
 0x679   : > { %v1198_v62 = vpop.permute.xlu0 %1197 }
 0x67a   : > { %v1204_v63 = vsel %vm1202_vm5, %v1198_v62, 0 }
 0x67b   : > { %2076 = vmatpush3.bf16.msra.mxu1 %v1204_v63 }
 0x67c   : > { %v2296_v0 = vpop.eup %2295  ;;  %2087 = vmatprep.subr.bf16.mxu1 %v2728_v18 }
 0x67d   : > { %v1194_v1 = vmul.f32 %v2296_v0, %v2292_v56  ;;  %v2009_v0 = vld [vmem:[%s819_s12] ss:$0 sm:$0xff]  ;;  %s3657_s12 = sld [smem:[#allocation57_spill]] (!%p2017_p3) }
 0x67f   : > { %v1196_v2 = vpack.c.bf16 %v1194_v1, %v1194_v1 }
 0x680   : > { %v2298_v3 = vpop.eup %2297 }
 0x681   : > { %v1193_v4 = vmul.f32 %v2298_v3, %v2294_v58  ;;  %2084 = vmatmul.mubr.msk.bf16.vlgmr.msra.gmra.mrb[8].mxu0 %vm1172_vm4, %v1196_v2 }
 0x682   : > { %2099 = vmatprep.mubr.msk.bf16.mxu0 %vm2729_vm1, %v2728_v18  ;;  %2096 = vmatpush3.bf16.msra.mxu0 %v2285_v34 }
 0x683   : > { %v1195_v5 = vpack.c.bf16 %v1193_v4, %v1193_v4  ;;  %2097 = vmatprep.subr.bf16.mxu0 %v2728_v18 }
 0x685   : > { %2078 = vmatmul.mubr.msk.bf16.vlgmr.msra.gmra.mrb[4].mxu1 %vm1172_vm4, %v1195_v5 }
 0x686   : > { %2091 = vmatprep.mubr.msk.bf16.mxu1 %vm2729_vm1, %v2728_v18  ;;  %2088 = vmatpush3.bf16.msra.mxu1 %v2283_v6 }
 0x687   : > { %2089 = vmatprep.subr.bf16.mxu1 %v2728_v18  ;;  %2098 = vmatpush3.bf16.msra.mxu0 %v2286_v35 }
 0x68a   : > { %2090 = vmatpush3.bf16.msra.mxu1 %v2284_v7 }
 0x68b   : > { %2103 = vmatprep.subr.bf16.mxu1 %v2728_v18 }
 0x754   : > { %v1288_v8 = vpop.f32.mrb[8].mxu0 }
 0x755   : > { %1295 = vrot.lane.b32.xlu1 %v1288_v8, %s2733_s8  ;;  %v2085_v9 = vpop.f32.mrb[9].mxu0 }
 0x756   : > { %v1291_v10 = vpop.f32.mrb[10].mxu0 }
 0x757   : > { %v2086_v11 = vpop.f32.mrb[11].mxu0 }
 0x758   : > { %v1240_v12 = vpop.f32.mrb[4].mxu1 }
 0x759   : > { %v2079_v13 = vpop.f32.mrb[5].mxu1 }
 0x75a   : > { %v1243_v14 = vpop.f32.mrb[6].mxu1 }
 0x75b   : > { %v2080_v15 = vpop.f32.mrb[7].mxu1 }
 0x7c7   : > { %v1296_v16 = vpop.permute.xlu1 %1295 }
 0x7c8   : > { %v1298_v17 = vsel %vm1076_vm3, %v1240_v12, %v1296_v16 }
 0x7c9   : > { %v1299_v19 = vpack.c.bf16 %v1298_v17, %v1298_v17  ;;  %v2015_v17 = vld [vmem:[%s948_s16] ss:$0 sm:$0xff] }
 0x7cb   : > { %2092 = vmatmul.mubr.msk.bf16.vlgmr.msra.gmra.mrb[8].mxu1 %vm1017_vm2, %v1299_v19 }
 0x7cc   : > { %2111 = vmatprep.mubr.msk.bf16.mxu1 %vm2729_vm1, %v2728_v18  ;;  %2104 = vmatpush3.bf16.msra.mxu1 %v2287_v45 }
 0x7cd   : > { %2105 = vmatprep.subr.bf16.mxu1 %v2728_v18 }
 0x7d0   : > { %2106 = vmatpush3.bf16.msra.mxu1 %v2288_v46 }
 0x7d1   : > { %2107 = vmatprep.subr.bf16.mxu1 %v2728_v18 }
 0x7d4   : > { %2108 = vmatpush3.bf16.msra.mxu1 %v2289_v47 }
 0x7d5   : > { %2109 = vmatprep.subr.bf16.mxu1 %v2728_v18 }
 0x7d8   : > { %2110 = vmatpush3.bf16.msra.mxu1 %v2290_v48 }
 0x89e   : > { %v1360_v22 = vpop.f32.mrb[8].mxu1 }
 0x89f   : > { %v1361_v23 = vadd.f32 %v1999_v21, %v1360_v22  ;;  %v2093_v24 = vpop.f32.mrb[9].mxu1  ;;  %v2016_v21 = vld [vmem:[%s951_s21] ss:$0 sm:$0xff] }
 0x8a0   : > { %v1363_v25 = vpop.f32.mrb[10].mxu1  ;;  %v2305_v24 = vld [vmem:[%s3657_s12] sm:$0xff] (!%p2017_p3)  }
 0x8a1   : > { %v2094_v26 = vpop.f32.mrb[11].mxu1  ;;  %v1366_v27 = vadd.f32 %v1361_v23, %v3349_v20  ;;  %v2734_v25 = vmov (!%p2017_p3), 0.0  }
 0x8a2   : > { %2115 = vmatprep.subr.bf16.mxu0 (!%p2017_p3), %v2734_v25  ;;  %v2306_v26 = vld [vmem:[%s3657_s12 + $0x8] sm:$0xff] (!%p2017_p3)  }
 0x8a3   : > { %v1369_v28 = vsel %vm1017_vm2, %v1366_v27, 0.0 }
 0x8a4   : > { %1370 = vadd.xlane.f32.xlu1 %v1369_v28  ;;  %v2018_v28 = vld [vmem:[%s3658_s0] ss:$0 sm:$0xff] (!%p2017_p3) }
 0x931   : > { %v1371_v29 = vpop.xlane.xlu1 %1370 }
 0x932   : > { %v1373_v30 = vmul.f32 0.03125, %v1371_v29 }
 0x934   : > { %v1374_v31 = vsub.f32 %v1366_v27, %v1373_v30 }
 0x936   : > { %v1375_v32 = vmul.f32 %v1374_v31, %v1374_v31 }
 0x938   : > { %v1376_v33 = vsel %vm1017_vm2, %v1375_v32, 0.0 }
 0x939   : > { %1377 = vadd.xlane.f32.xlu0 %v1376_v33 }
 0x9c6   : > { %v1378_v20 = vpop.xlane.xlu0 %1377 }
 0x9c7   : > { %v1379_v36 = vmul.f32 0.03125, %v1378_v20 }
 0x9c9   : > { %v1380_v37 = vadd.f32 1e-12, %v1379_v36 }
 0x9cb   : > { %2299 = vrsqrt.f32 %v1380_v37 }
 0x9d5   : > { %v2300_v38 = vpop.eup %2299 }
 0x9d6   : > { %v1382_v40 = vmul.f32 %v2300_v38, %v1374_v31 }
 0x9d8   : > { %v1389_v42 = vmul.f32 %v2003_v39, %v1382_v40 }
 0x9da   : > { %v1396_v43 = vadd.f32 %v2004_v41, %v1389_v42 }
 0x9dc   : > { %v1397_v44 = vpack.c.bf16 %v1396_v43, %v1396_v43 }
 0x9de   : > { %2100 = vmatmul.mubr.msk.bf16.vlgmr.msra.gmra.mrb[12].mxu0 %vm1017_vm2, %v1397_v44 }
 0x9df   : > { %2116 = vmatpush3.bf16.msra.mxu0 (!%p2017_p3), %v2305_v24  ;;  %2119 = vmatprep.mubr.msk.bf16.mxu0 (!%p2017_p3), %vm2735_vm7, %v2734_v25 }
 0x9e0   : > { %2117 = vmatprep.subr.bf16.mxu0 (!%p2017_p3), %v2734_v25 }
 0x9e3   : > { %2118 = vmatpush3.bf16.msra.mxu0 (!%p2017_p3), %v2306_v26 }
 0xab1   : > { %v1458_v50 = vpop.f32.mrb[12].mxu0 }
 0xab2   : > { %v1459_v51 = vadd.f32 %v2005_v49, %v1458_v50  ;;  %v2101_v52 = vpop.f32.mrb[13].mxu0 }
 0xab3   : > { %v1461_v53 = vpop.f32.mrb[14].mxu0 }
 0xab4   : > { %v1465_v54 = vmul.f32 0.044715, %v1459_v51  ;;  %v2102_v55 = vpop.f32.mrb[15].mxu0  ;;  %v1464_v61 = vmul.f32 0.5, %v1459_v51 }
 0xab6   : > { %v1466_v56 = vmul.f32 %v1465_v54, %v1459_v51 }
 0xab8   : > { %v1467_v57 = vmul.f32 %v1466_v56, %v1459_v51 }
 0xaba   : > { %v1468_v58 = vadd.f32 %v1467_v57, %v1459_v51 }
 0xabc   : > { %v1469_v59 = vmul.f32 0.7978846, %v1468_v58 }
 0xabe   : > { %2301 = vtanh.f32 %v1469_v59 }
 0xac8   : > { %v2302_v60 = vpop.eup %2301 }
 0xac9   : > { %v1471_v62 = vadd.f32 1.0, %v2302_v60 }
 0xacb   : > { %v1472_v63 = vmul.f32 %v1471_v62, %v1464_v61 }
 0xacd   : > { %v1473_v18 = vpack.c.bf16 %v1472_v63, %v1472_v63 }
 0xacf   : > { %2112 = vmatmul.mubr.msk.bf16.vlgmr.msra.gmra.mrb[12].mxu1 %vm1513_vm6, %v1473_v18 }
 0xba2   : > { %v1551_v1 = vpop.f32.mrb[12].mxu1 }
 0xba3   : > { %v1552_v2 = vadd.f32 %v2009_v0, %v1551_v1  ;;  %v2113_v3 = vpop.f32.mrb[13].mxu1 }
 0xba4   : > { %v1554_v4 = vpop.f32.mrb[14].mxu1 }
 0xba5   : > { %v2114_v5 = vpop.f32.mrb[15].mxu1  ;;  %v1557_v6 = vadd.f32 %v1552_v2, %v1396_v43 }
 0xba7   : > { %v1560_v7 = vsel %vm1017_vm2, %v1557_v6, 0.0 }
 0xba8   : > { %1561 = vadd.xlane.f32.xlu1 %v1560_v7 }
 0xc35   : > { %v1562_v8 = vpop.xlane.xlu1 %1561 }
 0xc36   : > { %v1563_v9 = vmul.f32 0.03125, %v1562_v8 }
 0xc38   : > { %v1564_v10 = vsub.f32 %v1557_v6, %v1563_v9 }
 0xc3a   : > { %v1565_v11 = vmul.f32 %v1564_v10, %v1564_v10 }
 0xc3c   : > { %v1566_v12 = vsel %vm1017_vm2, %v1565_v11, 0.0 }
 0xc3d   : > { %1567 = vadd.xlane.f32.xlu0 %v1566_v12 }
 0xcca   : > { %v1568_v13 = vpop.xlane.xlu0 %1567 }
 0xccb   : > { %v1569_v14 = vmul.f32 0.03125, %v1568_v13 }
 0xccd   : > { %v1570_v15 = vadd.f32 1e-12, %v1569_v14 }
 0xccf   : > { %2303 = vrsqrt.f32 %v1570_v15 }
 0xcd9   : > { %v2304_v16 = vpop.eup %2303 }
 0xcda   : > { %v1572_v19 = vmul.f32 %v2304_v16, %v1564_v10  ;;  %1591 = sbr.rel (%p2017_p3) target bundleno = 3513 (0xdb9), region = 136 }
 0xcdc   : > { %v1579_v22 = vmul.f32 %v2015_v17, %v1572_v19 }
 0xcde   : > { %v1586_v23 = vadd.f32 %v2016_v21, %v1579_v22 }
 0xce0   : > { %1587 = vst.msk [vmem:[#allocation2] sm:$0xff] %vm1017_vm2, %v1586_v23  ;;  %v1592_v27 = vpack.c.bf16 (!%p2017_p3), %v1586_v23, %v1586_v23 }
 0xce2   : > { %2120 = vmatmul.mubr.msk.bf16.vlgmr.msra.gmra.mrb[0].mxu0 %vm1017_vm2, %v1592_v27 }
 0xdb5   : > { %v1653_v29 = vpop.f32.mrb[0].mxu0 }
 0xdb6   : > { %v1654_v30 = vadd.f32 %v2018_v28, %v1653_v29  ;;  %v2121_v31 = vpop.f32.mrb[1].mxu0 }
 0xdb7   : > { %v1656_v32 = vpop.f32.mrb[2].mxu0 }
 0xdb8   : > { %1659 = vst [vmem:[%s3333_s4] sm:$0xff] %v1654_v30  ;;  %v2122_v33 = vpop.f32.mrb[3].mxu0 }
 0xdb9 PF: > { %s3659_s19 = sld [smem:[#allocation31_spill]]  ;;  %s3660_s27 = sld [smem:[#allocation59_spill]] }
 0xdba   : > { %s1674_s23 = sshll.u32 %s3333_s4, 4  ;;  %s1661_s26 = scalar_lea.sflag [#allocation5], %s3257_s18  ;;  %s1675_s23 = int_to_ptr.vmem [resolvable:$true] %s1674_s23 }
 0xdbb   : > { %s2575_s3 = scalar_lea.vmem %s1675_s23, 128  ;;  %p3662_p1 = scmp.ne.s32.totalorder %s3615_s10, 0 }
 0xdbc   : > { %p2576_p11 = scmp.ne.s32.totalorder %s1675_s23, %s2575_s3  ;;  %s2736_s6 = smov [#allocation18]  }
 0xdbd   : > { %s2579_s13 = sshll.u32 %s2736_s6, 4  ;;  %s2580_s13 = int_to_ptr.vmem [resolvable:$false] %s2579_s13 }
 0xdbe   : > { %p2577_p12 = pnand %p2576_p11, %p3662_p1  ;;  %s2581_s25 = scalar_lea.vmem %s2580_s13, 256 }
 0xdbf   : > { %s2023_s22 = sshll.u32 %s3659_s19, 7  ;;  %s3661_s5 = smov %s3660_s27 }
 0xdc0   : > { %s3449_s8 = scalar_lea.hbm %s3660_s27, %s2023_s22  ;;  %p2578_p10 = pneg %p2577_p12 }
 0xdc1   : > { %p2582_p0 = scmp.lt.s32.totalorder %s1675_s23, %s2580_s13  ;;  %p2583_p2 = scmp.lt.s32.totalorder %s2581_s25, %s2575_s3 }
 0xdc3   : > { %p2584_p7 = por %p2583_p2, %p2582_p0 }
 0xdc5   : > { %p2585_p6 = pnand %p2584_p7, %p2578_p10 }
 0xdc7   : > { %2588 = shalt.err (!%p2585_p6)
}
 0xdc8   : > { %s2589_s18 = scalar_lea.hbm %s3449_s8, 128  ;;  %s2593_s15 = scalar_lea.hbm %s3661_s5, 256 }
 0xdc9   : > { %p2590_p4 = scmp.ne.s32.totalorder %s3449_s8, %s2589_s18  ;;  %p2594_p5 = scmp.lt.u32.totalorder %s3449_s8, %s3661_s5 }
 0xdca   : > { %p2595_p9 = scmp.lt.u32.totalorder %s2593_s15, %s2589_s18  ;;  %p2597_p11 = scmp.lt.u32.totalorder %s2589_s18, %s3449_s8 }
 0xdcb   : > { %p2591_p13 = pnand %p2590_p4, %p3662_p1 }
 0xdcc   : > { %p2596_p3 = por %p2595_p9, %p2594_p5 }
 0xdcd   : > { %p2592_p8 = pneg %p2591_p13 }
 0xdce   : > { %p2598_p12 = por %p2597_p11, %p2596_p3 }
 0xdd0   : > { %p2599_p10 = pnand %p2598_p12, %p2592_p8 }
 0xdd2   : > { %2602 = shalt.err (!%p2599_p10)
}
 0xdd3   : > { %2143 = dma.vmem_to_hbm [thread:$0]  (%p3662_p1), %s1675_s23, 128, %s3449_s8, %s1661_s26  }
 0xdd4 PF: > { %s3663_s14 = sld [smem:[#allocation27_spill]]  ;;  %s3664_s7 = sld [smem:[#allocation36_spill]] }
 0xdd5   : > { %p2181_p0 = scmp.ge.s32.totalorder %s2717_s2, 2 }
 0xdda   : > { %s1686_s30 = sand.u32 1, %s3663_s14   ;;  %p3665_p2 = scmp.ne.s32.totalorder %s3664_s7, 0 }
 0xddb   : > { %s1687_s16 = scalar_lea.sflag [#allocation5], %s1686_s30 }
 0xddc   : > { %p2175_p7 = pnand %p2181_p0, %p3665_p2 }
 0xdde   : > { %2672 = dma.done.wait (!%p2175_p7), %s1687_s16, 128  }
 0xddf   : > { %2674 = vsyncadd (!%p2175_p7), %s1687_s16, 4294967168  ;;  %s46_s2 = sadd.s32 1, %s2717_s2   ;;  %s3666_s27 = sld [smem:[#allocation26_spill]] }
 0xde0   : > { %p43_p6 = scmp.ge.s32.totalorder %s46_s2, 6   ;;  %s3667_s9 = sld [smem:[#allocation38_spill]] }
 0xde1   : > { %s3668_s30 = sld [smem:[#allocation28_spill]]  ;;  %s3669_s0 = sld [smem:[#allocation29_spill]] }
 0xde2   : > { %s3670_s19 = sld [smem:[#allocation40_spill]]  ;;  %s3671_s1 = sld [smem:[#allocation32_spill]] }
 0xde3   : > { %s3672_s20 = sld [smem:[#allocation33_spill]]  ;;  %s3673_s21 = sld [smem:[#allocation37_spill]] }
 0xde4   : > { %s3674_s22 = sld [smem:[#allocation39_spill]]  ;;  %s3675_s28 = smov %s2685_s29 }
 0xde5   :  { %45 = sbr.rel (!%p43_p6) target bundleno = 37 (0x25), region = 252 }
 0xde6   : > { %s3676_s29 = smov %s3667_s9 }
 0xdec   :  { %1692 = vsyncpa [#allocation4], 1 }
 0xded   :  { %1694 = vsyncpa [#allocation4 + $0x1], 1 }
 0xdee   :  { %1695 = vsyncpa [#allocation7], 1 }
 0xdef   :  { %1697 = vsyncpa [#allocation7 + $0x1], 1 }
 0xdf0   :  { %1698 = vsyncpa [#allocation10], 1 }
 0xdf1   :  { %1700 = vsyncpa [#allocation10 + $0x1], 1 }
 0xdf2   :  { %1701 = vsyncpa [#allocation13], 1 }
 0xdf3   :  { %1703 = vsyncpa [#allocation13 + $0x1], 1 }
 0xdf4   :  { %1704 = vsyncpa [#allocation16], 1 }
 0xdf5   :  { %1706 = vsyncpa [#allocation16 + $0x1], 1 }
 0xdf6   :  { %1707 = vsyncpa [#allocation5], 1 }
 0xdf7   :  { %1709 = vsyncpa [#allocation5 + $0x1], 1 }

</bundles_post_ra>
